<compile_context>
chip_gen: v6e
topology: v6e:2x2x1
jax: 0.10.0
libtpu: 0.0.40
codegen_flags: <defaults>
</compile_context>

<pallas_src>
import functools

import jax
import jax.numpy as jnp
from jax import lax
from jax.experimental import pallas as pl
from jax.experimental.pallas import tpu as pltpu


def _mha_kernel(x_ref, wqkv_ref, wo_ref, bo_ref, o_ref, *, num_heads, head_dim):
    # x_ref:    (N, d_in)        current batch row (batch dim squeezed)
    # wqkv_ref: (3H, d_in, dh)   per-head [Wq*scale | Wk | Wv], bf16, resident
    # wo_ref:   (H, dh, D)       output projection weight, bf16, resident
    # bo_ref:   (1, D)           output projection bias, f32, resident
    # o_ref:    (N, D)           output block
    H, dh = num_heads, head_dim
    N, d_in = x_ref.shape
    G = 3 * H

    x_bf = x_ref[...].astype(jnp.bfloat16)                           # (N, d_in)

    # Head-batched QKV projection: q/k/v land directly in (H, N, dh) layout,
    # so no reshape / transpose / lane-slice relayout is needed in-kernel.
    x_b = jnp.broadcast_to(x_bf, (G, N, d_in))                       # (3H, N, d_in)
    qkv = lax.dot_general(x_b, wqkv_ref[...],
                          (((2,), (1,)), ((0,), (0,))),
                          preferred_element_type=jnp.float32)        # (3H, N, dh)
    qkv = qkv.astype(jnp.bfloat16)

    q = qkv[0:H]                # (H, N, dh)  (1/sqrt(dh) already folded into W_q)
    k = qkv[H:2 * H]            # (H, N, dh)
    v = qkv[2 * H:3 * H]        # (H, N, dh)

    # scores[h] = q[h] @ k[h]^T, batched over heads (no per-head Python loop).
    s = lax.dot_general(q, k, (((2,), (2,)), ((0,), (0,))),
                        preferred_element_type=jnp.float32)          # (H, N, N)

    # Causal mask (matches torch.triu(..., diagonal=1) -> -inf fill).
    row = lax.broadcasted_iota(jnp.int32, (H, N, N), 1)
    col = lax.broadcasted_iota(jnp.int32, (H, N, N), 2)
    s = jnp.where(col > row, jnp.float32(-1e30), s)

    # Numerically-stable softmax in f32; approx reciprocal runs on the EUP.
    m = jnp.max(s, axis=-1, keepdims=True)
    e = jnp.exp(s - m)
    denom = jnp.sum(e, axis=-1, keepdims=True)
    p = (e * pl.reciprocal(denom, approx=True)).astype(jnp.bfloat16)  # (H, N, N)
    # TODO(synk): nn.Dropout treated as identity (eval mode); training RNG not applied.

    # ctx[h] = p[h] @ v[h], batched over heads.
    ctx = lax.dot_general(p, v, (((2,), (1,)), ((0,), (0,))),
                          preferred_element_type=jnp.float32)         # (H, N, dh)

    # "Concat heads + out-proj" without any lane-axis concat: head-batched
    # (N, dh) @ (dh, D) matmuls, then a cheap sum over the leading head axis.
    out_h = lax.dot_general(ctx.astype(jnp.bfloat16), wo_ref[...],
                            (((2,), (1,)), ((0,), (0,))),
                            preferred_element_type=jnp.float32)       # (H, N, D)
    out = jnp.sum(out_h, axis=0) + bo_ref[...]                        # (N, D)
    o_ref[...] = out.astype(o_ref.dtype)


def prepare_mha_params(wq, wk, wv, wo, bo):
    """One-time parameter prep (hoisted out of the per-call forward pass).

    wq/wk/wv: (H, d_in, dh); wo: (H*dh, H*dh); bo: (H*dh,).
    Returns (wqkv_h, wo_h, bo_r): MXU operands pre-cast to bf16, the 1/sqrt(dh)
    softmax scale folded into the Q weights, wo reshaped head-major.
    """
    H, _, dh = wq.shape
    D = H * dh
    scale = 1.0 / (dh ** 0.5)
    wqkv_h = jnp.concatenate([wq * scale, wk, wv], axis=0).astype(jnp.bfloat16)  # (3H, d_in, dh)
    wo_h = wo.reshape(H, dh, D).astype(jnp.bfloat16)                             # (H, dh, D)
    bo_r = bo.reshape(1, D).astype(jnp.float32)                                  # (1, D)
    return wqkv_h, wo_h, bo_r


def _vmem_limit_bytes(N, d_in, H, dh):
    """Scoped-VMEM request sized from the actual per-step block footprint."""
    D = H * dh
    io = 2 * N * d_in * 4 + 2 * N * D * 4                # double-buffered x / out blocks
    w = 3 * H * d_in * dh * 2 + H * dh * D * 2 + D * 4   # resident weights (bf16) + bias
    inter = (3 * H * N * dh * (4 + 2)                    # qkv f32 + bf16
             + 3 * H * N * N * 4                         # scores / exp / probs
             + H * N * dh * (4 + 2)                      # ctx f32 + bf16
             + H * N * D * 4)                            # per-head out
    est = io + w + inter
    return int(min(max(4 * est, 16 * 1024 * 1024), 64 * 1024 * 1024))


def _build_mha_call(B, N, d_in, H, dh, single_buffer_weights):
    D = H * dh
    G = 3 * H

    def _const_spec(shape):
        index_map = lambda b: (0,) * len(shape)
        if single_buffer_weights:
            # Constant-index weights only ever need ONE resident VMEM copy.
            return pl.BlockSpec(shape, index_map, pipeline_mode=pl.Buffered(1))
        return pl.BlockSpec(shape, index_map)

    kernel = functools.partial(_mha_kernel, num_heads=H, head_dim=dh)
    return pl.pallas_call(
        kernel,
        out_shape=jax.ShapeDtypeStruct((B, N, D), jnp.float32),
        grid=(B,),
        in_specs=[
            pl.BlockSpec((pl.Squeezed(), N, d_in), lambda b: (b, 0, 0)),
            _const_spec((G, d_in, dh)),
            _const_spec((H, dh, D)),
            _const_spec((1, D)),
        ],
        out_specs=pl.BlockSpec((pl.Squeezed(), N, D), lambda b: (b, 0, 0)),
        compiler_params=pltpu.CompilerParams(
            dimension_semantics=("parallel",),
            vmem_limit_bytes=_vmem_limit_bytes(N, d_in, H, dh)),
    )


def multi_head_attention(x, wqkv_h, wo_h, bo_r, *, num_heads, head_dim):
    """x: (B, N, d_in); params from prepare_mha_params(). Returns (B, N, H*dh) f32."""
    B, N, d_in = x.shape
    try:
        call = _build_mha_call(B, N, d_in, num_heads, head_dim, True)
        return call(x, wqkv_h, wo_h, bo_r)
    except Exception:
        # pipeline_mode=pl.Buffered(1) unavailable on this jax version/backend:
        # fall back to default double-buffered weight blocks (same math).
        call = _build_mha_call(B, N, d_in, num_heads, head_dim, False)
        return call(x, wqkv_h, wo_h, bo_r)


def _reference(x, wq, wk, wv, wo, bo):
    """Pure-JAX f32 reference mirroring the PyTorch forward (dropout = identity)."""
    B, N, _ = x.shape
    dh = wq.shape[-1]
    q = jnp.einsum("bnd,hde->bhne", x, wq)
    k = jnp.einsum("bnd,hde->bhne", x, wk)
    v = jnp.einsum("bnd,hde->bhne", x, wv)
    scores = jnp.einsum("bhqe,bhke->bhqk", q, k)
    mask = jnp.triu(jnp.ones((N, N), dtype=bool), k=1)
    scores = jnp.where(mask, -jnp.inf, scores)
    attn = jax.nn.softmax(scores / (dh ** 0.5), axis=-1)
    ctx = jnp.einsum("bhqk,bhke->bhqe", attn, v)
    ctx = jnp.transpose(ctx, (0, 2, 1, 3)).reshape(B, N, -1)
    return ctx @ wo + bo


if __name__ == "__main__":
    # Small shapes consistent with the module's forward pass.
    B, N, d_in = 2, 16, 8          # batch, n_tokens, d_in
    H, dh = 4, 4                   # num_heads, d_out per head
    D = H * dh                     # concatenated head dim = out_proj features

    key = jax.random.PRNGKey(0)
    kx, kq, kk, kv, kw, kb = jax.random.split(key, 6)
    x = jax.random.normal(kx, (B, N, d_in), dtype=jnp.float32)
    # Per-head q/k/v projection weights stored as (d_in, dh) so y = x @ W
    # (PyTorch Linear stores (d_out, d_in) and does x @ W^T — same math).
    wq = jax.random.normal(kq, (H, d_in, dh), dtype=jnp.float32) * 0.1
    wk = jax.random.normal(kk, (H, d_in, dh), dtype=jnp.float32) * 0.1
    wv = jax.random.normal(kv, (H, d_in, dh), dtype=jnp.float32) * 0.1
    # Output projection (H*dh -> H*dh), stored (in, out).
    wo = jax.random.normal(kw, (D, D), dtype=jnp.float32) * 0.1
    bo = jax.random.normal(kb, (D,), dtype=jnp.float32) * 0.1

    # One-time parameter prep (fuse / reshape / bf16-cast / fold scale).
    params = prepare_mha_params(wq, wk, wv, wo, bo)

    out = multi_head_attention(x, *params, num_heads=H, head_dim=dh)
    out = jax.block_until_ready(out)

    ref = _reference(x, wq, wk, wv, wo, bo)
    assert out.shape == (B, N, D)
    # Tolerance accounts for bf16 MXU operands and the approximate (EUP)
    # softmax reciprocal; accumulation/softmax are f32.
    assert jnp.allclose(out, ref, atol=2e-2, rtol=2e-2), "mismatch vs reference"
    print("KERNEL_OK")
</pallas_src>

<mosaic_0001>
module attributes {stable_mosaic.version = 11 : i64} {
  func.func @_mha_kernel(%arg0: i32, %arg1: memref<1x16x8xf32, #tpu.memory_space<vmem>>, %arg2: memref<12x8x4xbf16, #tpu.memory_space<vmem>>, %arg3: memref<4x4x16xbf16, #tpu.memory_space<vmem>>, %arg4: memref<1x16xf32, #tpu.memory_space<vmem>>, %arg5: memref<1x16x16xf32, #tpu.memory_space<vmem>>) attributes {dimension_semantics = [#tpu.dimension_semantics<parallel>], iteration_bounds = array<i64: 2>, scalar_prefetch = 0 : i64, scratch_operands = 0 : i64, tpu.core_type = #tpu.core_type<tc>, window_params = [{transform_indices = @transform_0, window_bounds = array<i64: 1, 16, 8>}, {pipeline_mode = #tpu.pipeline_mode<synchronous>, transform_indices = @transform_1, window_bounds = array<i64: 12, 8, 4>}, {pipeline_mode = #tpu.pipeline_mode<synchronous>, transform_indices = @transform_2, window_bounds = array<i64: 4, 4, 16>}, {pipeline_mode = #tpu.pipeline_mode<synchronous>, transform_indices = @transform_3, window_bounds = array<i64: 1, 16>}, {transform_indices = @transform_4, window_bounds = array<i64: 1, 16, 16>}]} {
    %c0 = arith.constant 0 : index
    %c0_0 = arith.constant 0 : index
    %c0_1 = arith.constant 0 : index
    %0 = vector.load %arg1[%c0, %c0_0, %c0_1] : memref<1x16x8xf32, #tpu.memory_space<vmem>>, vector<1x16x8xf32>
    %1 = vector.shape_cast %0 : vector<1x16x8xf32> to vector<16x8xf32>
    %2 = arith.truncf %1 : vector<16x8xf32> to vector<16x8xbf16>
    %3 = vector.shape_cast %2 : vector<16x8xbf16> to vector<1x16x8xbf16>
    %4 = vector.broadcast %3 : vector<1x16x8xbf16> to vector<12x16x8xbf16>
    %c0_2 = arith.constant 0 : index
    %c0_3 = arith.constant 0 : index
    %c0_4 = arith.constant 0 : index
    %5 = vector.load %arg2[%c0_2, %c0_3, %c0_4] : memref<12x8x4xbf16, #tpu.memory_space<vmem>>, vector<12x8x4xbf16>
    %cst = arith.constant dense<0.000000e+00> : vector<12x16x4xf32>
    %6 = tpu.matmul %4, %5, %cst {dimension_numbers = #tpu.dot_dimension_numbers<[2], [1], [1], [2], [0, 0, 0, 1, 1, 2], [0], [0]>} : vector<12x16x8xbf16>, vector<12x8x4xbf16>, vector<12x16x4xf32> -> vector<12x16x4xf32>
    %7 = arith.truncf %6 : vector<12x16x4xf32> to vector<12x16x4xbf16>
    %8 = vector.extract_strided_slice %7 {offsets = [0, 0, 0], sizes = [4, 16, 4], strides = [1, 1, 1]} : vector<12x16x4xbf16> to vector<4x16x4xbf16>
    %9 = vector.extract_strided_slice %7 {offsets = [4, 0, 0], sizes = [4, 16, 4], strides = [1, 1, 1]} : vector<12x16x4xbf16> to vector<4x16x4xbf16>
    %10 = vector.extract_strided_slice %7 {offsets = [8, 0, 0], sizes = [4, 16, 4], strides = [1, 1, 1]} : vector<12x16x4xbf16> to vector<4x16x4xbf16>
    %cst_5 = arith.constant dense<0.000000e+00> : vector<4x16x16xf32>
    %11 = tpu.matmul %8, %9, %cst_5 {dimension_numbers = #tpu.dot_dimension_numbers<[2], [2], [1], [1], [0, 0, 0, 1, 1, 1], [0], [0]>} : vector<4x16x4xbf16>, vector<4x16x4xbf16>, vector<4x16x16xf32> -> vector<4x16x16xf32>
    %12 = tpu.iota {dimensions = array<i32: 1>} : vector<4x16x16xi32>
    %13 = tpu.iota {dimensions = array<i32: 2>} : vector<4x16x16xi32>
    %14 = arith.cmpi sgt, %13, %12 : vector<4x16x16xi32>
    %cst_6 = arith.constant -1.000000e+30 : f32
    %15 = vector.broadcast %cst_6 : f32 to vector<4x16x16xf32>
    %16 = arith.select %14, %15, %11 : vector<4x16x16xi1>, vector<4x16x16xf32>
    %cst_7 = arith.constant dense<0xFF800000> : vector<4x16xf32>
    %17 = vector.multi_reduction <maximumf>, %16, %cst_7 [2] : vector<4x16x16xf32> to vector<4x16xf32>
    %18 = vector.shape_cast %17 : vector<4x16xf32> to vector<4x16x1xf32>
    %19 = vector.broadcast %18 : vector<4x16x1xf32> to vector<4x16x16xf32>
    %20 = arith.subf %16, %19 : vector<4x16x16xf32>
    %21 = math.exp %20 : vector<4x16x16xf32>
    %cst_8 = arith.constant dense<0.000000e+00> : vector<4x16xf32>
    %22 = vector.multi_reduction <add>, %21, %cst_8 [2] : vector<4x16x16xf32> to vector<4x16xf32>
    %23 = vector.shape_cast %22 : vector<4x16xf32> to vector<4x16x1xf32>
    %24 = tpu.reciprocal %23 {approx = true} : vector<4x16x1xf32> -> vector<4x16x1xf32>
    %25 = vector.broadcast %24 : vector<4x16x1xf32> to vector<4x16x16xf32>
    %26 = arith.mulf %21, %25 : vector<4x16x16xf32>
    %27 = arith.truncf %26 : vector<4x16x16xf32> to vector<4x16x16xbf16>
    %cst_9 = arith.constant dense<0.000000e+00> : vector<4x16x4xf32>
    %28 = tpu.matmul %27, %10, %cst_9 {dimension_numbers = #tpu.dot_dimension_numbers<[2], [1], [1], [2], [0, 0, 0, 1, 1, 2], [0], [0]>} : vector<4x16x16xbf16>, vector<4x16x4xbf16>, vector<4x16x4xf32> -> vector<4x16x4xf32>
    %29 = arith.truncf %28 : vector<4x16x4xf32> to vector<4x16x4xbf16>
    %c0_10 = arith.constant 0 : index
    %c0_11 = arith.constant 0 : index
    %c0_12 = arith.constant 0 : index
    %30 = vector.load %arg3[%c0_10, %c0_11, %c0_12] : memref<4x4x16xbf16, #tpu.memory_space<vmem>>, vector<4x4x16xbf16>
    %cst_13 = arith.constant dense<0.000000e+00> : vector<4x16x16xf32>
    %31 = tpu.matmul %29, %30, %cst_13 {dimension_numbers = #tpu.dot_dimension_numbers<[2], [1], [1], [2], [0, 0, 0, 1, 1, 2], [0], [0]>} : vector<4x16x4xbf16>, vector<4x4x16xbf16>, vector<4x16x16xf32> -> vector<4x16x16xf32>
    %cst_14 = arith.constant dense<0.000000e+00> : vector<16x16xf32>
    %32 = vector.multi_reduction <add>, %31, %cst_14 [0] : vector<4x16x16xf32> to vector<16x16xf32>
    %c0_15 = arith.constant 0 : index
    %c0_16 = arith.constant 0 : index
    %33 = vector.load %arg4[%c0_15, %c0_16] : memref<1x16xf32, #tpu.memory_space<vmem>>, vector<1x16xf32>
    %34 = vector.broadcast %33 : vector<1x16xf32> to vector<16x16xf32>
    %35 = arith.addf %32, %34 : vector<16x16xf32>
    %c0_17 = arith.constant 0 : index
    %c0_18 = arith.constant 0 : index
    %c0_19 = arith.constant 0 : index
    %36 = vector.load %arg5[%c0_17, %c0_18, %c0_19] : memref<1x16x16xf32, #tpu.memory_space<vmem>>, vector<1x16x16xf32>
    %37 = vector.shape_cast %36 : vector<1x16x16xf32> to vector<16x16xf32>
    %38 = vector.shape_cast %35 : vector<16x16xf32> to vector<1x16x16xf32>
    tpu.vector_store %arg5[%c0_17, %c0_18, %c0_19], %38 {strides = array<i32>} : memref<1x16x16xf32, #tpu.memory_space<vmem>>, vector<1x16x16xf32>,
    return
  }
  func.func @transform_0(%arg0: i32) -> (i32, i32, i32) {
    %c0_i32 = arith.constant 0 : i32
    %c0_i32_0 = arith.constant 0 : i32
    %c0_i32_1 = arith.constant 0 : i32
    return %arg0, %c0_i32, %c0_i32_0 : i32, i32, i32
  }
  func.func @transform_1(%arg0: i32) -> (i32, i32, i32) {
    %c0_i32 = arith.constant 0 : i32
    %c0_i32_0 = arith.constant 0 : i32
    %c0_i32_1 = arith.constant 0 : i32
    %c0_i32_2 = arith.constant 0 : i32
    return %c0_i32, %c0_i32_0, %c0_i32_1 : i32, i32, i32
  }
  func.func @transform_2(%arg0: i32) -> (i32, i32, i32) {
    %c0_i32 = arith.constant 0 : i32
    %c0_i32_0 = arith.constant 0 : i32
    %c0_i32_1 = arith.constant 0 : i32
    %c0_i32_2 = arith.constant 0 : i32
    return %c0_i32, %c0_i32_0, %c0_i32_1 : i32, i32, i32
  }
  func.func @transform_3(%arg0: i32) -> (i32, i32) {
    %c0_i32 = arith.constant 0 : i32
    %c0_i32_0 = arith.constant 0 : i32
    %c0_i32_1 = arith.constant 0 : i32
    return %c0_i32, %c0_i32_0 : i32, i32
  }
  func.func @transform_4(%arg0: i32) -> (i32, i32, i32) {
    %c0_i32 = arith.constant 0 : i32
    %c0_i32_0 = arith.constant 0 : i32
    %c0_i32_1 = arith.constant 0 : i32
    return %arg0, %c0_i32, %c0_i32_0 : i32, i32, i32
  }
}

module attributes {stable_mosaic.version = 11 : i64} {
  func.func @_mha_kernel(%arg0: i32, %arg1: memref<1x16x8xf32, #tpu.memory_space<vmem>>, %arg2: memref<12x8x4xbf16, #tpu.memory_space<vmem>>, %arg3: memref<4x4x16xbf16, #tpu.memory_space<vmem>>, %arg4: memref<1x16xf32, #tpu.memory_space<vmem>>, %arg5: memref<1x16x16xf32, #tpu.memory_space<vmem>>) attributes {dimension_semantics = [#tpu.dimension_semantics<parallel>], iteration_bounds = array<i64: 2>, scalar_prefetch = 0 : i64, scratch_operands = 0 : i64, tpu.core_type = #tpu.core_type<tc>, window_params = [{transform_indices = @transform_0, window_bounds = array<i64: 1, 16, 8>}, {pipeline_mode = #tpu.pipeline_mode<synchronous>, transform_indices = @transform_1, window_bounds = array<i64: 12, 8, 4>}, {pipeline_mode = #tpu.pipeline_mode<synchronous>, transform_indices = @transform_2, window_bounds = array<i64: 4, 4, 16>}, {pipeline_mode = #tpu.pipeline_mode<synchronous>, transform_indices = @transform_3, window_bounds = array<i64: 1, 16>}, {transform_indices = @transform_4, window_bounds = array<i64: 1, 16, 16>}]} {
    %c0 = arith.constant 0 : index
    %c0_0 = arith.constant 0 : index
    %c0_1 = arith.constant 0 : index
    %0 = vector.load %arg1[%c0, %c0_0, %c0_1] : memref<1x16x8xf32, #tpu.memory_space<vmem>>, vector<1x16x8xf32>
    %1 = vector.shape_cast %0 : vector<1x16x8xf32> to vector<16x8xf32>
    %2 = arith.truncf %1 : vector<16x8xf32> to vector<16x8xbf16>
    %3 = vector.shape_cast %2 : vector<16x8xbf16> to vector<1x16x8xbf16>
    %4 = vector.broadcast %3 : vector<1x16x8xbf16> to vector<12x16x8xbf16>
    %c0_2 = arith.constant 0 : index
    %c0_3 = arith.constant 0 : index
    %c0_4 = arith.constant 0 : index
    %5 = vector.load %arg2[%c0_2, %c0_3, %c0_4] : memref<12x8x4xbf16, #tpu.memory_space<vmem>>, vector<12x8x4xbf16>
    %cst = arith.constant dense<0.000000e+00> : vector<12x16x4xf32>
    %6 = tpu.matmul %4, %5, %cst {dimension_numbers = #tpu.dot_dimension_numbers<[2], [1], [1], [2], [0, 0, 0, 1, 1, 2], [0], [0]>} : vector<12x16x8xbf16>, vector<12x8x4xbf16>, vector<12x16x4xf32> -> vector<12x16x4xf32>
    %7 = arith.truncf %6 : vector<12x16x4xf32> to vector<12x16x4xbf16>
    %8 = vector.extract_strided_slice %7 {offsets = [0, 0, 0], sizes = [4, 16, 4], strides = [1, 1, 1]} : vector<12x16x4xbf16> to vector<4x16x4xbf16>
    %9 = vector.extract_strided_slice %7 {offsets = [4, 0, 0], sizes = [4, 16, 4], strides = [1, 1, 1]} : vector<12x16x4xbf16> to vector<4x16x4xbf16>
    %10 = vector.extract_strided_slice %7 {offsets = [8, 0, 0], sizes = [4, 16, 4], strides = [1, 1, 1]} : vector<12x16x4xbf16> to vector<4x16x4xbf16>
    %cst_5 = arith.constant dense<0.000000e+00> : vector<4x16x16xf32>
    %11 = tpu.matmul %8, %9, %cst_5 {dimension_numbers = #tpu.dot_dimension_numbers<[2], [2], [1], [1], [0, 0, 0, 1, 1, 1], [0], [0]>} : vector<4x16x4xbf16>, vector<4x16x4xbf16>, vector<4x16x16xf32> -> vector<4x16x16xf32>
    %12 = tpu.iota {dimensions = array<i32: 1>} : vector<4x16x16xi32>
    %13 = tpu.iota {dimensions = array<i32: 2>} : vector<4x16x16xi32>
    %14 = arith.cmpi sgt, %13, %12 : vector<4x16x16xi32>
    %cst_6 = arith.constant -1.000000e+30 : f32
    %15 = vector.broadcast %cst_6 : f32 to vector<4x16x16xf32>
    %16 = arith.select %14, %15, %11 : vector<4x16x16xi1>, vector<4x16x16xf32>
    %cst_7 = arith.constant dense<0xFF800000> : vector<4x16xf32>
    %17 = vector.multi_reduction <maximumf>, %16, %cst_7 [2] : vector<4x16x16xf32> to vector<4x16xf32>
    %18 = vector.shape_cast %17 : vector<4x16xf32> to vector<4x16x1xf32>
    %19 = vector.broadcast %18 : vector<4x16x1xf32> to vector<4x16x16xf32>
    %20 = arith.subf %16, %19 : vector<4x16x16xf32>
    %21 = math.exp %20 : vector<4x16x16xf32>
    %cst_8 = arith.constant dense<0.000000e+00> : vector<4x16xf32>
    %22 = vector.multi_reduction <add>, %21, %cst_8 [2] : vector<4x16x16xf32> to vector<4x16xf32>
    %23 = vector.shape_cast %22 : vector<4x16xf32> to vector<4x16x1xf32>
    %24 = tpu.reciprocal %23 {approx = true} : vector<4x16x1xf32> -> vector<4x16x1xf32>
    %25 = vector.broadcast %24 : vector<4x16x1xf32> to vector<4x16x16xf32>
    %26 = arith.mulf %21, %25 : vector<4x16x16xf32>
    %27 = arith.truncf %26 : vector<4x16x16xf32> to vector<4x16x16xbf16>
    %cst_9 = arith.constant dense<0.000000e+00> : vector<4x16x4xf32>
    %28 = tpu.matmul %27, %10, %cst_9 {dimension_numbers = #tpu.dot_dimension_numbers<[2], [1], [1], [2], [0, 0, 0, 1, 1, 2], [0], [0]>} : vector<4x16x16xbf16>, vector<4x16x4xbf16>, vector<4x16x4xf32> -> vector<4x16x4xf32>
    %29 = arith.truncf %28 : vector<4x16x4xf32> to vector<4x16x4xbf16>
    %c0_10 = arith.constant 0 : index
    %c0_11 = arith.constant 0 : index
    %c0_12 = arith.constant 0 : index
    %30 = vector.load %arg3[%c0_10, %c0_11, %c0_12] : memref<4x4x16xbf16, #tpu.memory_space<vmem>>, vector<4x4x16xbf16>
    %cst_13 = arith.constant dense<0.000000e+00> : vector<4x16x16xf32>
    %31 = tpu.matmul %29, %30, %cst_13 {dimension_numbers = #tpu.dot_dimension_numbers<[2], [1], [1], [2], [0, 0, 0, 1, 1, 2], [0], [0]>} : vector<4x16x4xbf16>, vector<4x4x16xbf16>, vector<4x16x16xf32> -> vector<4x16x16xf32>
    %cst_14 = arith.constant dense<0.000000e+00> : vector<16x16xf32>
    %32 = vector.multi_reduction <add>, %31, %cst_14 [0] : vector<4x16x16xf32> to vector<16x16xf32>
    %c0_15 = arith.constant 0 : index
    %c0_16 = arith.constant 0 : index
    %33 = vector.load %arg4[%c0_15, %c0_16] : memref<1x16xf32, #tpu.memory_space<vmem>>, vector<1x16xf32>
    %34 = vector.broadcast %33 : vector<1x16xf32> to vector<16x16xf32>
    %35 = arith.addf %32, %34 : vector<16x16xf32>
    %c0_17 = arith.constant 0 : index
    %c0_18 = arith.constant 0 : index
    %c0_19 = arith.constant 0 : index
    %36 = vector.load %arg5[%c0_17, %c0_18, %c0_19] : memref<1x16x16xf32, #tpu.memory_space<vmem>>, vector<1x16x16xf32>
    %37 = vector.shape_cast %36 : vector<1x16x16xf32> to vector<16x16xf32>
    %38 = vector.shape_cast %35 : vector<16x16xf32> to vector<1x16x16xf32>
    tpu.vector_store %arg5[%c0_17, %c0_18, %c0_19], %38 {strides = array<i32>} : memref<1x16x16xf32, #tpu.memory_space<vmem>>, vector<1x16x16xf32>,
    return
  }
  func.func @transform_0(%arg0: i32) -> (i32, i32, i32) {
    %c0_i32 = arith.constant 0 : i32
    %c0_i32_0 = arith.constant 0 : i32
    %c0_i32_1 = arith.constant 0 : i32
    return %arg0, %c0_i32, %c0_i32_0 : i32, i32, i32
  }
  func.func @transform_1(%arg0: i32) -> (i32, i32, i32) {
    %c0_i32 = arith.constant 0 : i32
    %c0_i32_0 = arith.constant 0 : i32
    %c0_i32_1 = arith.constant 0 : i32
    %c0_i32_2 = arith.constant 0 : i32
    return %c0_i32, %c0_i32_0, %c0_i32_1 : i32, i32, i32
  }
  func.func @transform_2(%arg0: i32) -> (i32, i32, i32) {
    %c0_i32 = arith.constant 0 : i32
    %c0_i32_0 = arith.constant 0 : i32
    %c0_i32_1 = arith.constant 0 : i32
    %c0_i32_2 = arith.constant 0 : i32
    return %c0_i32, %c0_i32_0, %c0_i32_1 : i32, i32, i32
  }
  func.func @transform_3(%arg0: i32) -> (i32, i32) {
    %c0_i32 = arith.constant 0 : i32
    %c0_i32_0 = arith.constant 0 : i32
    %c0_i32_1 = arith.constant 0 : i32
    return %c0_i32, %c0_i32_0 : i32, i32
  }
  func.func @transform_4(%arg0: i32) -> (i32, i32, i32) {
    %c0_i32 = arith.constant 0 : i32
    %c0_i32_0 = arith.constant 0 : i32
    %c0_i32_1 = arith.constant 0 : i32
    return %arg0, %c0_i32, %c0_i32_0 : i32, i32, i32
  }
}

</mosaic_0001>

<bundles_post_ra>
// kernel: tpu_custom_call.1
= control target key start
LH: loop header
LB: loop body
LE: loop exit
PB: predicated region body
PF: predicated region fallthrough
CT: control target
= control target key end

     0   :  { %9 = vsyncpa [#allocation3], 0  ;;  %s2251_s0 = inlined_call_operand.vmem [shape: f32[2,16,8], index: 0, kind: input, shape index: {}]   ;;  %s2252_s1 = inlined_call_operand.vmem [shape: bf16[12,8,4], index: 1, kind: input, shape index: {}]   ;;  %s2253_s2 = inlined_call_operand.vmem [shape: bf16[4,4,16], index: 2, kind: input, shape index: {}]   ;;  %s2254_s3 = inlined_call_operand.vmem [shape: f32[1,16], index: 3, kind: input, shape index: {}]   ;;  %s2255_s4 = inlined_call_operand.hbm [shape: f32[2,16,16], index: 4, kind: output, shape index: {}]  }
   0x1   :  { %11 = vsyncpa [#allocation3 + $0x1], 0  ;;  %s1926_s15 = smov 0   ;;  %s1928_s16 = smov 0  }
   0x2   :  { %s1930_s17 = smov 0   ;;  %s1932_s18 = smov 0  }
   0x3 LB: > { %s1947_s19 = sadd.s32 4294967295, %s1894_s18   ;;  %s1528_s20 = sadd.s32 4294967294, %s1894_s18   ;;  %s1894_s18 = sphi %s1932_s18, %s2261_s18   ;;  %s1890_s17 = sphi %s1930_s17, %s2260_s17   ;;  %s1886_s16 = sphi %s1928_s16, %s2259_s16   ;;  %s1882_s15 = sphi %s1926_s15, %s2258_s15  }
   0x4   : > { %s1951_s21 = sadd.s32 1, %s1894_s18   ;;  %s113_s22 = sadd.s32 1, %s1890_s17 }
   0x5   : > { %s110_s23 = ssub.s32 %s1894_s18, %s1951_s21  ;;  %p123_p0 = scmp.ne.s32.totalorder %s1890_s17, %s1886_s16 }
   0x6   : > { %p111_p1 = scmp.eq.s32.totalorder %s110_s23, 0  ;;  %p124_p2 = scmp.eq.s32.totalorder %s1947_s19, 1 }
   0x7   : > { %p129_p3 = scmp.ne.s32.totalorder %s1886_s16, %s1882_s15  ;;  %p130_p4 = scmp.eq.s32.totalorder %s1528_s20, 1 }
   0x8   : > { %s1962_s24 = scalar_select %p111_p1, %s1890_s17, %s113_s22  }
   0x9   : > { %p1964_p5 = por %p124_p2, %p123_p0  ;;  %p1968_p6 = por %p130_p4, %p129_p3 }
   0xa   : > { %p1531_p7 = scmp.ge.s32.totalorder %s1894_s18, 1  ;;  %p165_p8 = scmp.lt.s32.totalorder %s1894_s18, 3 }
   0xc   : > { %p166_p9 = pnand %p1531_p7, %p165_p8 }
   0xd   : > { %p191_p10 = scmp.lt.s32.totalorder (!%p166_p9), %s1947_s19, 1  ;;  %s188_s30 = sand.u32 (!%p166_p9), 1, %s1886_s16  }
   0xe   : > { %169 = sbr.rel (%p166_p9) target bundleno = 1190 (0x4a6), region = 36  ;;  %s1566_s8 = sshll.u32 (!%p166_p9), %s1947_s19, 8 }
   0xf   : > { %s1898_s20 = smov (!%p166_p9), [#allocation2]  }
  0x10   : > { %s1838_s22 = sshll.u32 (!%p166_p9), %s1898_s20, 4  ;;  %s1839_s22 = int_to_ptr.vmem [resolvable:$false] %s1838_s22 }
  0x11   : > { %s1840_s23 = scalar_lea.vmem (!%p166_p9), %s1839_s22, 512 }
  0x13   : > { %v200_v0 = vld [vmem:[%s2252_s1] sm:$0xf]  ;;  %vm216_vm0 = vcmask 1043456   ;;  %v201_v1 = vld [vmem:[%s2252_s1 + $0x4] sm:$0xf]  ;;  %v1896_v2 = vmov 0.0  }
  0x14   : > { %1615 = vmatprep.subr.bf16.mxu0 %v1896_v2  ;;  %1621 = vmatprep.subr.bf16.mxu1 %v1896_v2  ;;  %v218_v3 = vsel %vm216_vm0, %v200_v0, 0  ;;  %v262_v4 = vsel %vm216_vm0, %v201_v1, 0  ;;  %vm1897_vm1 = vmmov 0   ;;  %s192_s5 = scalar_select %p191_p10, %s1947_s19, 1  ;;  %v202_v5 = vld [vmem:[%s2252_s1 + $0x8] sm:$0xf] }
  0x15   : > { %1616 = vmatpush3.bf16.msra.mxu0 %v218_v3  ;;  %1622 = vmatpush3.bf16.msra.mxu1 %v262_v4  ;;  %v203_v6 = vld [vmem:[%s2252_s1 + $0xc] sm:$0xf]  ;;  %vm212_vm2 = vcmask 64512   ;;  %v306_v10 = vsel %vm216_vm0, %v202_v5, 0  ;;  %v204_v12 = vld [vmem:[%s2252_s1 + $0x10] sm:$0xf] }
  0x16   : > { %1617 = vmatprep.mubr.msk.bf16.mxu0 %vm1897_vm1, %v1896_v2  ;;  %1623 = vmatprep.mubr.msk.bf16.mxu1 %vm1897_vm1, %v1896_v2  ;;  %s1565_s6 = sshll.u32 %s192_s5, 4  ;;  %v350_v11 = vsel %vm216_vm0, %v203_v6, 0  ;;  %v205_v13 = vld [vmem:[%s2252_s1 + $0x14] sm:$0xf]  ;;  %v394_v14 = vsel %vm216_vm0, %v204_v12, 0  ;;  %vm757_vm3 = vcmask 31744  }
  0x17   : > { %1627 = vmatprep.subr.bf16.mxu0 %v1896_v2  ;;  %1633 = vmatprep.subr.bf16.mxu1 %v1896_v2  ;;  %s195_s13 = scalar_lea.vmem %s2251_s0, %s1565_s6  ;;  %v438_v15 = vsel %vm216_vm0, %v205_v13, 0  ;;  %v206_v16 = vld [vmem:[%s2252_s1 + $0x18] sm:$0xf]  ;;  %v207_v17 = vld [vmem:[%s2252_s1 + $0x1c] sm:$0xf]  ;;  %vm961_vm5 = vcmask 130048  }
  0x18   : > { %v197_v7 = vld [vmem:[%s195_s13] sm:$0xff]  ;;  %v198_v8 = vld [vmem:[%s195_s13 + $0x8] sm:$0xff]  ;;  %v482_v18 = vsel %vm216_vm0, %v206_v16, 0  ;;  %v526_v19 = vsel %vm216_vm0, %v207_v17, 0  ;;  %vm1241_vm7 = vcmask 1041408   ;;  %s1532_s5 = sshll.u32 %s188_s30, 4  ;;  %s2204_s13 = scalar_lea.hbm %s2255_s4, %s1566_s8 }
  0x19   : > { %v199_v9 = vpack.c.bf16 %v198_v8, %v197_v7  ;;  %v208_v20 = vld [vmem:[%s2252_s1 + $0x20] sm:$0xf]  ;;  %v209_v22 = vld [vmem:[%s2252_s1 + $0x24] sm:$0xf]  ;;  %v210_v24 = vld [vmem:[%s2252_s1 + $0x28] sm:$0xf] }
  0x1a   : > { %v570_v21 = vsel %vm216_vm0, %v208_v20, 0  ;;  %v614_v23 = vsel %vm216_vm0, %v209_v22, 0  ;;  %v658_v25 = vsel %vm216_vm0, %v210_v24, 0  ;;  %v211_v26 = vld [vmem:[%s2252_s1 + $0x2c] sm:$0xf]  ;;  %s190_s9 = scalar_lea.vmem [#allocation2], %s1532_s5 }
  0x1b   : > { %1618 = vmatmul.mubr.msk.bf16.vlgmr.msra.gmra.mxu0 %vm212_vm2, %v199_v9  ;;  %1624 = vmatmul.mubr.msk.bf16.vlgmr.msra.gmra.mxu1 %vm212_vm2, %v199_v9  ;;  %v702_v27 = vsel %vm216_vm0, %v211_v26, 0  ;;  %s1466_s10 = sshll.u32 %s190_s9, 4  ;;  %s2211_s19 = scalar_lea.sflag [#allocation3], %s188_s30  ;;  %s2206_s10 = int_to_ptr.vmem [resolvable:$true] %s1466_s10 }
  0x1c   : > { %1628 = vmatpush3.bf16.msra.mxu0 %v306_v10  ;;  %1634 = vmatpush3.bf16.msra.mxu1 %v350_v11  ;;  %s1834_s14 = scalar_lea.vmem %s2206_s10, 256  ;;  %p1841_p0 = scmp.lt.s32.totalorder %s2206_s10, %s1839_s22 }
  0x1d   : > { %1629 = vmatprep.mubr.msk.bf16.mxu0 %vm1897_vm1, %v1896_v2  ;;  %1635 = vmatprep.mubr.msk.bf16.mxu1 %vm1897_vm1, %v1896_v2  ;;  %p1835_p11 = scmp.ne.s32.totalorder %s2206_s10, %s1834_s14  ;;  %p1842_p1 = scmp.lt.s32.totalorder %s1840_s23, %s1834_s14 }
  0x1e   : > { %1639 = vmatprep.subr.bf16.mxu0 %v1896_v2  ;;  %1645 = vmatprep.subr.bf16.mxu1 %v1896_v2 }
  0x1f   : > { %p1836_p12 = pnand %p1835_p11, %p1964_p5  ;;  %p1843_p2 = por %p1842_p1, %p1841_p0 }
  0x21   : > { %p1837_p13 = pneg %p1836_p12 }
  0x23   : > { %1630 = vmatmul.mubr.msk.bf16.vlgmr.msra.gmra.mxu0 %vm212_vm2, %v199_v9  ;;  %1636 = vmatmul.mubr.msk.bf16.vlgmr.msra.gmra.mxu1 %vm212_vm2, %v199_v9  ;;  %p1844_p3 = pnand %p1843_p2, %p1837_p13 }
  0x24   : > { %1640 = vmatpush3.bf16.msra.mxu0 %v394_v14  ;;  %1646 = vmatpush3.bf16.msra.mxu1 %v438_v15 }
  0x25   : > { %1641 = vmatprep.mubr.msk.bf16.mxu0 %vm1897_vm1, %v1896_v2  ;;  %1647 = vmatprep.mubr.msk.bf16.mxu1 %vm1897_vm1, %v1896_v2 }
  0x26   : > { %1651 = vmatprep.subr.bf16.mxu0 %v1896_v2  ;;  %1657 = vmatprep.subr.bf16.mxu1 %v1896_v2 }
  0x2b   : > { %1642 = vmatmul.mubr.msk.bf16.vlgmr.msra.gmra.mxu0 %vm212_vm2, %v199_v9  ;;  %1648 = vmatmul.mubr.msk.bf16.vlgmr.msra.gmra.mxu1 %vm212_vm2, %v199_v9 }
  0x2c   : > { %1652 = vmatpush3.bf16.msra.mxu0 %v482_v18  ;;  %1658 = vmatpush3.bf16.msra.mxu1 %v526_v19 }
  0x2d   : > { %1653 = vmatprep.mubr.msk.bf16.mxu0 %vm1897_vm1, %v1896_v2  ;;  %1659 = vmatprep.mubr.msk.bf16.mxu1 %vm1897_vm1, %v1896_v2 }
  0x2e   : > { %1663 = vmatprep.subr.bf16.mxu0 %v1896_v2  ;;  %1669 = vmatprep.subr.bf16.mxu1 %v1896_v2 }
  0x33   : > { %1654 = vmatmul.mubr.msk.bf16.vlgmr.msra.gmra.mxu0 %vm212_vm2, %v199_v9  ;;  %1660 = vmatmul.mubr.msk.bf16.vlgmr.msra.gmra.mxu1 %vm212_vm2, %v199_v9 }
  0x34   : > { %1665 = vmatprep.mubr.msk.bf16.mxu0 %vm1897_vm1, %v1896_v2  ;;  %1671 = vmatprep.mubr.msk.bf16.mxu1 %vm1897_vm1, %v1896_v2 }
  0x35   : > { %1664 = vmatpush3.bf16.msra.mxu0 %v570_v21  ;;  %1670 = vmatpush3.bf16.msra.mxu1 %v614_v23 }
  0x36   : > { %1675 = vmatprep.subr.bf16.mxu0 %v1896_v2  ;;  %1681 = vmatprep.subr.bf16.mxu1 %v1896_v2 }
  0x3b   : > { %1666 = vmatmul.mubr.msk.bf16.vlgmr.msra.gmra.mxu0 %vm212_vm2, %v199_v9  ;;  %1672 = vmatmul.mubr.msk.bf16.vlgmr.msra.gmra.mxu1 %vm212_vm2, %v199_v9 }
  0x3c   : > { %1677 = vmatprep.mubr.msk.bf16.mxu0 %vm1897_vm1, %v1896_v2  ;;  %1676 = vmatpush3.bf16.msra.mxu0 %v658_v25 }
  0x3d   : > { %1683 = vmatprep.mubr.msk.bf16.mxu1 %vm1897_vm1, %v1896_v2  ;;  %1687 = vmatprep.subr.bf16.mxu0 %v1896_v2 }
  0x3e   : > { %1682 = vmatpush3.bf16.msra.mxu1 %v702_v27 }
  0x3f   : > { %1693 = vmatprep.subr.bf16.mxu1 %v1896_v2 }
  0x43   : > { %1678 = vmatmul.mubr.msk.bf16.vlgmr.msra.gmra.mxu0 %vm212_vm2, %v199_v9  ;;  %1684 = vmatmul.mubr.msk.bf16.vlgmr.msra.gmra.mxu1 %vm212_vm2, %v199_v9 }
  0x44   : > { %1689 = vmatprep.mubr.msk.bf16.mxu0 %vm1897_vm1, %v1896_v2  ;;  %1695 = vmatprep.mubr.msk.bf16.mxu1 %vm1897_vm1, %v1896_v2 }
  0xdb   : > { %v254_v28 = vpop.f32.mrf.mxu0  ;;  %v298_v29 = vpop.f32.mrf.mxu1 }
  0xdd   : > { %v1619_v30 = vpop.f32.mrf.mxu0  ;;  %v1625_v31 = vpop.f32.mrf.mxu1 }
  0xdf   : > { %v257_v32 = vpop.f32.mrf.mxu0  ;;  %v301_v33 = vpop.f32.mrf.mxu1 }
  0xe0   : > { %v745_v62 = vpack.c.bf16 %v257_v32, %v254_v28  ;;  %v746_v63 = vpack.c.bf16 %v301_v33, %v298_v29  ;;  %v946_v29 = vlaneseq }
  0xe1   : > { %v1620_v34 = vpop.f32.mrf.mxu0  ;;  %v1626_v35 = vpop.f32.mrf.mxu1 }
  0xe2   : > { %v947_v30 = vshrl.u32 %v946_v29, 7  ;;  %v950_v31 = vand.u32 127, %v946_v29 }
  0xe3   : > { %v342_v36 = vpop.f32.mrf.mxu0  ;;  %v386_v37 = vpop.f32.mrf.mxu1 }
  0xe4   : > { %vm951_vm4 = vcmp.gt.s32.totalorder %v950_v31, %v947_v30  ;;  %v948_v32 = vadd.s32 8, %v947_v30 }
  0xe5   : > { %v1631_v38 = vpop.f32.mrf.mxu0  ;;  %v1637_v39 = vpop.f32.mrf.mxu1 }
  0xe6   : > { %vm952_vm6 = vcmp.gt.s32.totalorder %v950_v31, %v948_v32 }
  0xe7   : > { %v345_v40 = vpop.f32.mrf.mxu0  ;;  %v389_v41 = vpop.f32.mrf.mxu1 }
  0xe8   : > { %v747_v7 = vpack.c.bf16 %v345_v40, %v342_v36  ;;  %v748_v8 = vpack.c.bf16 %v389_v41, %v386_v37 }
  0xe9   : > { %v1632_v42 = vpop.f32.mrf.mxu0  ;;  %v1638_v43 = vpop.f32.mrf.mxu1 }
  0xeb   : > { %v430_v44 = vpop.f32.mrf.mxu0  ;;  %v474_v45 = vpop.f32.mrf.mxu1 }
  0xed   : > { %v1643_v46 = vpop.f32.mrf.mxu0  ;;  %v1649_v47 = vpop.f32.mrf.mxu1 }
  0xef   : > { %v433_v48 = vpop.f32.mrf.mxu0  ;;  %v477_v49 = vpop.f32.mrf.mxu1 }
  0xf0   : > { %v749_v50 = vpack.c.bf16 %v433_v48, %v430_v44  ;;  %v750_v51 = vpack.c.bf16 %v477_v49, %v474_v45 }
  0xf1   : > { %v1644_v52 = vpop.f32.mrf.mxu0  ;;  %v1650_v53 = vpop.f32.mrf.mxu1 }
  0xf2   : > { %v762_v54 = vsel %vm757_vm3, %v749_v50, 0  ;;  %v809_v55 = vsel %vm757_vm3, %v750_v51, 0 }
  0xf3   : > { %v518_v56 = vpop.f32.mrf.mxu0  ;;  %v562_v57 = vpop.f32.mrf.mxu1  ;;  %1688 = vmatpush3.bf16.xpose.msra.mxu0 %v762_v54  ;;  %1694 = vmatpush3.bf16.xpose.msra.mxu1 %v809_v55 }
  0xf4   : > { %1699 = vmatprep.subr.bf16.mxu0 %v1896_v2  ;;  %1705 = vmatprep.subr.bf16.mxu1 %v1896_v2 }
  0xf5   : > { %v1655_v58 = vpop.f32.mrf.mxu0  ;;  %v1661_v59 = vpop.f32.mrf.mxu1 }
  0xf7   : > { %v521_v60 = vpop.f32.mrf.mxu0  ;;  %v565_v61 = vpop.f32.mrf.mxu1 }
  0xf8   : > { %v751_v0 = vpack.c.bf16 %v521_v60, %v518_v56  ;;  %v752_v1 = vpack.c.bf16 %v565_v61, %v562_v57 }
  0xf9   : > { %v1656_v3 = vpop.f32.mrf.mxu0  ;;  %v1662_v4 = vpop.f32.mrf.mxu1 }
  0xfa   : > { %v856_v5 = vsel %vm757_vm3, %v751_v0, 0  ;;  %v903_v6 = vsel %vm757_vm3, %v752_v1, 0  ;;  %1690 = vmatmul.mubr.msk.bf16.vlgmr.msra.gmra.mxu0 %vm757_vm3, %v745_v62  ;;  %1696 = vmatmul.mubr.msk.bf16.vlgmr.msra.gmra.mxu1 %vm757_vm3, %v746_v63 }
  0xfb   : > { %1700 = vmatpush3.bf16.xpose.msra.mxu0 %v856_v5  ;;  %1706 = vmatpush3.bf16.xpose.msra.mxu1 %v903_v6  ;;  %v606_v9 = vpop.f32.mrf.mxu0  ;;  %v650_v12 = vpop.f32.mrf.mxu1 }
  0xfc   : > { %1701 = vmatprep.mubr.msk.bf16.mxu0 %vm1897_vm1, %v1896_v2  ;;  %1707 = vmatprep.mubr.msk.bf16.mxu1 %vm1897_vm1, %v1896_v2 }
  0xfd   : > { %1711 = vmatprep.subr.bf16.mxu0 %v1896_v2  ;;  %1717 = vmatprep.subr.bf16.mxu1 %v1896_v2  ;;  %v1667_v10 = vpop.f32.mrf.mxu0  ;;  %v1673_v15 = vpop.f32.mrf.mxu1 }
  0xff   : > { %v609_v11 = vpop.f32.mrf.mxu0  ;;  %v653_v16 = vpop.f32.mrf.mxu1 }
 0x100   : > { %v753_v13 = vpack.c.bf16 %v609_v11, %v606_v9  ;;  %v754_v18 = vpack.c.bf16 %v653_v16, %v650_v12 }
 0x101   : > { %v1668_v14 = vpop.f32.mrf.mxu0  ;;  %v1674_v19 = vpop.f32.mrf.mxu1 }
 0x102   : > { %1702 = vmatmul.mubr.msk.bf16.vlgmr.msra.gmra.mxu0 %vm757_vm3, %v747_v7  ;;  %1708 = vmatmul.mubr.msk.bf16.vlgmr.msra.gmra.mxu1 %vm757_vm3, %v748_v8 }
 0x103   : > { %1713 = vmatprep.mubr.msk.bf16.mxu0 %vm1897_vm1, %v1896_v2  ;;  %1719 = vmatprep.mubr.msk.bf16.mxu1 %vm1897_vm1, %v1896_v2  ;;  %v2101_v17 = vpop.f32.mrf.mxu0  ;;  %v2106_v22 = vpop.f32.mrf.mxu1 }
 0x104   : > { %1712 = vmatpush3.bf16.msra.mxu0 %v753_v13  ;;  %1718 = vmatpush3.bf16.msra.mxu1 %v754_v18 }
 0x105   : > { %1723 = vmatprep.subr.bf16.mxu0 %v1896_v2  ;;  %v1679_v20 = vpop.f32.mrf.mxu0  ;;  %1729 = vmatprep.subr.bf16.mxu1 %v1896_v2  ;;  %v1685_v25 = vpop.f32.mrf.mxu1 }
 0x107   : > { %v2104_v21 = vpop.f32.mrf.mxu0  ;;  %v2111_v26 = vpop.f32.mrf.mxu1 }
 0x108   : > { %v755_v23 = vpack.c.bf16 %v2104_v21, %v2101_v17  ;;  %v756_v27 = vpack.c.bf16 %v2111_v26, %v2106_v22  ;;  %v1234_v22 = vld [vmem:[%s2253_s2] sm:$0x3] }
 0x109   : > { %v1680_v24 = vpop.f32.mrf.mxu0  ;;  %v1686_v28 = vpop.f32.mrf.mxu1  ;;  %v1243_v26 = vsel %vm1241_vm7, %v1234_v22, 0 }
 0x1ba   : > { %v798_v33 = vpop.f32.mrf.mxu0  ;;  %v845_v34 = vpop.f32.mrf.mxu1 }
 0x1bb   : > { %v953_v35 = vsel %vm951_vm4, -1e+30, %v798_v33  ;;  %v955_v36 = vsel %vm951_vm4, -1e+30, %v845_v34 }
 0x1bc   : > { %v1691_v37 = vpop.f32.mrf.mxu0  ;;  %v1697_v38 = vpop.f32.mrf.mxu1  ;;  %v968_v39 = vsel %vm961_vm5, %v955_v36, -inf  ;;  %v962_v40 = vsel %vm961_vm5, %v953_v35, -inf }
 0x1bd   : > { %969 = vmax.xlane.f32.xlu1 %v968_v39  ;;  %963 = vmax.xlane.f32.xlu0 %v962_v40 }
 0x1be   : > { %v801_v41 = vpop.f32.mrf.mxu0  ;;  %v848_v42 = vpop.f32.mrf.mxu1 }
 0x1bf   : > { %v954_v43 = vsel %vm952_vm6, -1e+30, %v801_v41  ;;  %v956_v44 = vsel %vm952_vm6, -1e+30, %v848_v42 }
 0x1c0   : > { %v1692_v45 = vpop.f32.mrf.mxu0  ;;  %v1698_v46 = vpop.f32.mrf.mxu1  ;;  %v971_v47 = vsel %vm961_vm5, %v956_v44, -inf  ;;  %v965_v48 = vsel %vm961_vm5, %v954_v43, -inf }
 0x1c1   : > { %972 = vmax.xlane.f32.xlu1 %v971_v47  ;;  %966 = vmax.xlane.f32.xlu0 %v965_v48 }
 0x1c2   : > { %v892_v49 = vpop.f32.mrf.mxu0  ;;  %v939_v50 = vpop.f32.mrf.mxu1 }
 0x1c3   : > { %v957_v51 = vsel %vm951_vm4, -1e+30, %v892_v49  ;;  %v959_v55 = vsel %vm951_vm4, -1e+30, %v939_v50 }
 0x1c4   : > { %v1703_v52 = vpop.f32.mrf.mxu0  ;;  %v1709_v53 = vpop.f32.mrf.mxu1  ;;  %v974_v54 = vsel %vm961_vm5, %v957_v51, -inf  ;;  %v980_v61 = vsel %vm961_vm5, %v959_v55, -inf }
 0x1c5   : > { %975 = vmax.xlane.f32.xlu0 %v974_v54 }
 0x1c6   : > { %v895_v56 = vpop.f32.mrf.mxu0  ;;  %v942_v57 = vpop.f32.mrf.mxu1 }
 0x1c7   : > { %v958_v58 = vsel %vm952_vm6, -1e+30, %v895_v56  ;;  %v960_v63 = vsel %vm952_vm6, -1e+30, %v942_v57 }
 0x1c8   : > { %v1704_v59 = vpop.f32.mrf.mxu0  ;;  %v1710_v60 = vpop.f32.mrf.mxu1  ;;  %v977_v62 = vsel %vm961_vm5, %v958_v58, -inf  ;;  %v983_v0 = vsel %vm961_vm5, %v960_v63, -inf }
 0x1c9   : > { %981 = vmax.xlane.f32.xlu0 %v980_v61  ;;  %978 = vmax.xlane.f32.xlu1 %v977_v62 }
 0x1cd   : > { %984 = vmax.xlane.f32.xlu1 %v983_v0 }
 0x246   : > { %v970_v1 = vpop.xlane.xlu1 %969  ;;  %v964_v3 = vpop.xlane.xlu0 %963 }
 0x247   : > { %v988_v4 = vsub.f32 %v955_v36, %v970_v1  ;;  %v986_v5 = vsub.f32 %v953_v35, %v964_v3 }
 0x249   : > { %v994_v6 = vmul.f32 1.442695, %v986_v5  ;;  %v998_v7 = vmul.f32 1.442695, %v988_v4 }
 0x24a   : > { %v973_v8 = vpop.xlane.xlu1 %972  ;;  %v967_v9 = vpop.xlane.xlu0 %966 }
 0x24b   : > { %v989_v10 = vsub.f32 %v956_v44, %v973_v8  ;;  %v987_v11 = vsub.f32 %v954_v43, %v967_v9  ;;  %1802 = vpow2.f32 %v994_v6 }
 0x24c   : > { %1804 = vpow2.f32 %v998_v7 }
 0x24d   : > { %v996_v12 = vmul.f32 1.442695, %v987_v11  ;;  %v1000_v13 = vmul.f32 1.442695, %v989_v10 }
 0x24e   : > { %v976_v14 = vpop.xlane.xlu0 %975 }
 0x24f   : > { %v990_v15 = vsub.f32 %v957_v51, %v976_v14  ;;  %1806 = vpow2.f32 %v996_v12 }
 0x250   : > { %1808 = vpow2.f32 %v1000_v13  ;;  %v1236_v13 = vld [vmem:[%s2253_s2 + $0x4] sm:$0x3] }
 0x251   : > { %v1002_v16 = vmul.f32 1.442695, %v990_v15 }
 0x252   : > { %v982_v18 = vpop.xlane.xlu0 %981  ;;  %v979_v19 = vpop.xlane.xlu1 %978 }
 0x253   : > { %1810 = vpow2.f32 %v1002_v16  ;;  %v992_v20 = vsub.f32 %v959_v55, %v982_v18  ;;  %v991_v24 = vsub.f32 %v958_v58, %v979_v19  ;;  %v1337_v18 = vsel %vm1241_vm7, %v1236_v13, 0 }
 0x255   : > { %v1006_v25 = vmul.f32 1.442695, %v992_v20  ;;  %v1004_v28 = vmul.f32 1.442695, %v991_v24  ;;  %v1237_v24 = vld [vmem:[%s2253_s2 + $0x6] sm:$0x3] }
 0x256   : > { %v985_v29 = vpop.xlane.xlu1 %984 }
 0x257   : > { %1812 = vpow2.f32 %v1006_v25  ;;  %v993_v30 = vsub.f32 %v960_v63, %v985_v29 }
 0x258   : > { %1814 = vpow2.f32 %v1004_v28  ;;  %v1803_v31 = vpop.eup %1802 }
 0x259   : > { %v1008_v32 = vmul.f32 1.442695, %v993_v30  ;;  %v1010_v33 = vsel %vm961_vm5, %v1803_v31, 0.0  ;;  %v1805_v34 = vpop.eup %1804  ;;  %v1384_v30 = vsel %vm1241_vm7, %v1237_v24, 0 }
 0x25a   : > { %1011 = vadd.xlane.f32.xlu0 %v1010_v33  ;;  %v1016_v36 = vsel %vm961_vm5, %v1805_v34, 0.0 }
 0x25b   : > { %1816 = vpow2.f32 %v1008_v32 }
 0x25c   : > { %v1807_v35 = vpop.eup %1806 }
 0x25d   : > { %v1013_v37 = vsel %vm961_vm5, %v1807_v35, 0.0  ;;  %v1809_v38 = vpop.eup %1808 }
 0x25e   : > { %1017 = vadd.xlane.f32.xlu0 %v1016_v36  ;;  %1014 = vadd.xlane.f32.xlu1 %v1013_v37  ;;  %v1019_v41 = vsel %vm961_vm5, %v1809_v38, 0.0 }
 0x260   : > { %v1811_v39 = vpop.eup %1810 }
 0x261   : > { %v1022_v40 = vsel %vm961_vm5, %v1811_v39, 0.0 }
 0x262   : > { %1023 = vadd.xlane.f32.xlu0 %v1022_v40  ;;  %1020 = vadd.xlane.f32.xlu1 %v1019_v41 }
 0x264   : > { %v1813_v42 = vpop.eup %1812 }
 0x265   : > { %v1815_v43 = vpop.eup %1814  ;;  %v1028_v44 = vsel %vm961_vm5, %v1813_v42, 0.0 }
 0x266   : > { %v1025_v45 = vsel %vm961_vm5, %v1815_v43, 0.0  ;;  %1029 = vadd.xlane.f32.xlu0 %v1028_v44 }
 0x267   : > { %1026 = vadd.xlane.f32.xlu1 %v1025_v45 }
 0x268   : > { %v1817_v46 = vpop.eup %1816 }
 0x269   : > { %v1031_v47 = vsel %vm961_vm5, %v1817_v46, 0.0 }
 0x26b   : > { %1032 = vadd.xlane.f32.xlu1 %v1031_v47 }
 0x2e3   : > { %v1012_v48 = vpop.xlane.xlu0 %1011 }
 0x2e4   : > { %1818 = vrcp.f32 %v1012_v48 }
 0x2e7   : > { %v1018_v49 = vpop.xlane.xlu0 %1017  ;;  %v1015_v50 = vpop.xlane.xlu1 %1014 }
 0x2e8   : > { %1820 = vrcp.f32 %v1015_v50 }
 0x2e9   : > { %1822 = vrcp.f32 %v1018_v49 }
 0x2eb   : > { %v1024_v51 = vpop.xlane.xlu0 %1023  ;;  %v1021_v52 = vpop.xlane.xlu1 %1020 }
 0x2ec   : > { %1824 = vrcp.f32 %v1021_v52 }
 0x2ed   : > { %1826 = vrcp.f32 %v1024_v51 }
 0x2ef   : > { %v1030_v53 = vpop.xlane.xlu0 %1029 }
 0x2f0   : > { %v1027_v54 = vpop.xlane.xlu1 %1026 }
 0x2f1   : > { %1828 = vrcp.f32 %v1027_v54  ;;  %v1819_v56 = vpop.eup %1818 }
 0x2f2   : > { %1830 = vrcp.f32 %v1030_v53  ;;  %v1042_v58 = vmul.f32 %v1819_v56, %v1803_v31 }
 0x2f4   : > { %v1033_v55 = vpop.xlane.xlu1 %1032 }
 0x2f5   : > { %1832 = vrcp.f32 %v1033_v55  ;;  %v1821_v57 = vpop.eup %1820 }
 0x2f6   : > { %v1043_v59 = vmul.f32 %v1821_v57, %v1807_v35  ;;  %v1823_v60 = vpop.eup %1822 }
 0x2f7   : > { %v1044_v63 = vmul.f32 %v1823_v60, %v1805_v34 }
 0x2f8   : > { %v1050_v61 = vpack.c.bf16 %v1043_v59, %v1042_v58 }
 0x2f9   : > { %v1825_v62 = vpop.eup %1824 }
 0x2fa   : > { %1714 = vmatmul.mubr.msk.bf16.vlgmr.msra.gmra.mxu0 %vm961_vm5, %v1050_v61  ;;  %v1045_v0 = vmul.f32 %v1825_v62, %v1809_v38  ;;  %v1827_v1 = vpop.eup %1826  ;;  %v1559_v61 = vld [vmem:[%s2254_s3] ss:$0 sm:$0xff] }
 0x2fb   : > { %1724 = vmatpush3.bf16.msra.mxu0 %v755_v23  ;;  %1725 = vmatprep.mubr.msk.bf16.mxu0 %vm1897_vm1, %v1896_v2  ;;  %v1046_v6 = vmul.f32 %v1827_v1, %v1811_v39 }
 0x2fc   : > { %v1051_v3 = vpack.c.bf16 %v1045_v0, %v1044_v63  ;;  %1735 = vmatprep.subr.bf16.mxu0 %v1896_v2 }
 0x2fe   : > { %v1829_v4 = vpop.eup %1828  ;;  %1720 = vmatmul.mubr.msk.bf16.vlgmr.msra.gmra.mxu1 %vm961_vm5, %v1051_v3 }
 0x2ff   : > { %v1831_v5 = vpop.eup %1830  ;;  %v1047_v7 = vmul.f32 %v1829_v4, %v1815_v43  ;;  %1730 = vmatpush3.bf16.msra.mxu1 %v756_v27  ;;  %1731 = vmatprep.mubr.msk.bf16.mxu1 %vm1897_vm1, %v1896_v2  ;;  %v1235_v27 = vld [vmem:[%s2253_s2 + $0x2] sm:$0x3] }
 0x300   : > { %1741 = vmatprep.subr.bf16.mxu1 %v1896_v2  ;;  %v1048_v23 = vmul.f32 %v1831_v5, %v1813_v42  ;;  %v1290_v10 = vsel %vm1241_vm7, %v1235_v27, 0 }
 0x301   : > { %v1052_v21 = vpack.c.bf16 %v1047_v7, %v1046_v6 }
 0x302   : > { %v1833_v17 = vpop.eup %1832 }
 0x303   : > { %v1049_v8 = vmul.f32 %v1833_v17, %v1817_v46  ;;  %1726 = vmatmul.mubr.msk.bf16.vlgmr.msra.gmra.mxu0 %vm961_vm5, %v1052_v21 }
 0x304   : > { %1737 = vmatprep.mubr.msk.bf16.mxu0 %vm1897_vm1, %v1896_v2  ;;  %1736 = vmatpush3.bf16.msra.mxu0 %v1243_v26 }
 0x305   : > { %v1053_v9 = vpack.c.bf16 %v1049_v8, %v1048_v23  ;;  %1747 = vmatprep.subr.bf16.mxu0 %v1896_v2 }
 0x307   : > { %1732 = vmatmul.mubr.msk.bf16.vlgmr.msra.gmra.mxu1 %vm961_vm5, %v1053_v9 }
 0x308   : > { %1743 = vmatprep.mubr.msk.bf16.mxu1 %vm1897_vm1, %v1896_v2  ;;  %1742 = vmatpush3.bf16.msra.mxu1 %v1290_v10 }
 0x309   : > { %1753 = vmatprep.subr.bf16.mxu1 %v1896_v2 }
 0x3ba   : > { %v1091_v11 = vpop.f32.mrf.mxu0 }
 0x3bc   : > { %v1715_v12 = vpop.f32.mrf.mxu0 }
 0x3be   : > { %v1094_v14 = vpop.f32.mrf.mxu0  ;;  %v1135_v15 = vpop.f32.mrf.mxu1 }
 0x3bf   : > { %v1230_v16 = vpack.c.bf16 %v1094_v14, %v1091_v11 }
 0x3c0   : > { %v1716_v19 = vpop.f32.mrf.mxu0  ;;  %v1721_v20 = vpop.f32.mrf.mxu1 }
 0x3c1   : > { %1738 = vmatmul.mubr.msk.bf16.vlgmr.msra.gmra.mxu0 %vm757_vm3, %v1230_v16 }
 0x3c2   : > { %v1138_v25 = vpop.f32.mrf.mxu1  ;;  %1748 = vmatpush3.bf16.msra.mxu0 %v1337_v18  ;;  %1749 = vmatprep.mubr.msk.bf16.mxu0 %vm1897_vm1, %v1896_v2 }
 0x3c3   : > { %v1179_v28 = vpop.f32.mrf.mxu0  ;;  %v1231_v29 = vpack.c.bf16 %v1138_v25, %v1135_v15 }
 0x3c4   : > { %v1722_v31 = vpop.f32.mrf.mxu1 }
 0x3c5   : > { %v1727_v32 = vpop.f32.mrf.mxu0  ;;  %1744 = vmatmul.mubr.msk.bf16.vlgmr.msra.gmra.mxu1 %vm757_vm3, %v1231_v29 }
 0x3c6   : > { %1754 = vmatpush3.bf16.msra.mxu1 %v1384_v30  ;;  %1755 = vmatprep.mubr.msk.bf16.mxu1 %vm1897_vm1, %v1896_v2 }
 0x3c7   : > { %v1182_v33 = vpop.f32.mrf.mxu0  ;;  %v1223_v34 = vpop.f32.mrf.mxu1 }
 0x3c8   : > { %v1232_v35 = vpack.c.bf16 %v1182_v33, %v1179_v28 }
 0x3c9   : > { %v1728_v36 = vpop.f32.mrf.mxu0  ;;  %v1733_v37 = vpop.f32.mrf.mxu1 }
 0x3ca   : > { %1750 = vmatmul.mubr.msk.bf16.vlgmr.msra.gmra.mxu0 %vm757_vm3, %v1232_v35 }
 0x3cb   : > { %v1226_v38 = vpop.f32.mrf.mxu1 }
 0x3cc   : > { %v1233_v39 = vpack.c.bf16 %v1226_v38, %v1223_v34 }
 0x3cd   : > { %v1734_v40 = vpop.f32.mrf.mxu1 }
 0x3ce   : > { %1756 = vmatmul.mubr.msk.bf16.vlgmr.msra.gmra.mxu1 %vm757_vm3, %v1233_v39 }
 0x481   : > { %v1279_v41 = vpop.f32.mrf.mxu0 }
 0x482   : > { %v1427_v49 = vsel %vm961_vm5, %v1279_v41, 0.0 }
 0x483   : > { %v1739_v42 = vpop.f32.mrf.mxu0 }
 0x485   : > { %v1282_v43 = vpop.f32.mrf.mxu0  ;;  %v1326_v44 = vpop.f32.mrf.mxu1 }
 0x486   : > { %v1428_v2 = vsel %vm961_vm5, %v1326_v44, 0.0  ;;  %v1434_v58 = vsel %vm961_vm5, %v1282_v43, 0.0 }
 0x487   : > { %v1740_v45 = vpop.f32.mrf.mxu0  ;;  %v1745_v46 = vpop.f32.mrf.mxu1  ;;  %v1429_v51 = vadd.f32 %v1428_v2, %v1427_v49 }
 0x489   : > { %v1329_v47 = vpop.f32.mrf.mxu1 }
 0x48a   : > { %v1373_v48 = vpop.f32.mrf.mxu0  ;;  %v1435_v54 = vsel %vm961_vm5, %v1329_v47, 0.0 }
 0x48b   : > { %v1430_v50 = vsel %vm961_vm5, %v1373_v48, 0.0  ;;  %v1746_v52 = vpop.f32.mrf.mxu1  ;;  %v1436_v62 = vadd.f32 %v1435_v54, %v1434_v58 }
 0x48c   : > { %v1751_v53 = vpop.f32.mrf.mxu0  ;;  %v1431_v55 = vadd.f32 %v1430_v50, %v1429_v51 }
 0x48e   : > { %v1376_v56 = vpop.f32.mrf.mxu0  ;;  %v1420_v57 = vpop.f32.mrf.mxu1 }
 0x48f   : > { %v1437_v59 = vsel %vm961_vm5, %v1376_v56, 0.0  ;;  %v1432_v60 = vsel %vm961_vm5, %v1420_v57, 0.0 }
 0x490   : > { %v1433_v63 = vadd.f32 %v1432_v60, %v1431_v55  ;;  %v1752_v0 = vpop.f32.mrf.mxu0  ;;  %v1757_v1 = vpop.f32.mrf.mxu1  ;;  %v1438_v3 = vadd.f32 %v1437_v59, %v1436_v62 }
 0x492   : > { %v1448_v4 = vadd.f32 %v1559_v61, %v1433_v63  ;;  %v1423_v5 = vpop.f32.mrf.mxu1 }
 0x493   : > { %v1439_v6 = vsel %vm961_vm5, %v1423_v5, 0.0 }
 0x494   : > { %1450 = vst.msk [vmem:[%s190_s9] sm:$0xff] %vm961_vm5, %v1448_v4  ;;  %v1440_v7 = vadd.f32 %v1439_v6, %v1438_v3  ;;  %v1758_v17 = vpop.f32.mrf.mxu1 }
 0x496   : > { %v1449_v21 = vadd.f32 %v1559_v61, %v1440_v7 }
 0x498   : > { %1451 = vst.msk [vmem:[%s190_s9 + $0x8] sm:$0xff] %vm961_vm5, %v1449_v21 }
 0x499   : > { %1847 = shalt.err (!%p1844_p3)
}
 0x49a   : > { %s1848_s27 = scalar_lea.hbm %s2204_s13, 256  ;;  %s1852_s30 = scalar_lea.hbm %s2255_s4, 512 }
 0x49b   : > { %p1849_p4 = scmp.ne.s32.totalorder %s2204_s13, %s1848_s27  ;;  %p1853_p9 = scmp.lt.s32.totalorder %s2204_s13, %s2255_s4 }
 0x49c   : > { %p1854_p10 = scmp.lt.s32.totalorder %s1852_s30, %s1848_s27 }
 0x49d   : > { %p1850_p7 = pnand %p1849_p4, %p1964_p5 }
 0x49e   : > { %p1855_p11 = por %p1854_p10, %p1853_p9 }
 0x49f   : > { %p1851_p8 = pneg %p1850_p7 }
 0x4a1   : > { %p1856_p12 = pnand %p1855_p11, %p1851_p8 }
 0x4a3   : > { %1859 = shalt.err (!%p1856_p12)
}
 0x4a4   : > { %s1899_s7 = smov 128   ;;  %s1900_s8 = smov 8  }
 0x4a5   : > { %1759 = dma.vmem_to_hbm [thread:$0]  (%p1964_p5), %s2206_s10, 256, %s2204_s13, %s2211_s19, %s1899_s7, %s1899_s7, %s1900_s8  }
 0x4a6 PF: > { %p1765_p13 = scmp.ge.s32.totalorder %s1894_s18, 2  ;;  %s1481_s9 = sand.u32 1, %s1882_s15  }
 0x4a7   : > { %s1482_s11 = scalar_lea.sflag [#allocation3], %s1481_s9 }
 0x4a8   : > { %p1762_p0 = pnand %p1765_p13, %p1968_p6 }
 0x4aa   : > { %p1763_p1 = pneg %p1762_p0 }
 0x4ac   : > { %1877 = dma.done.wait (%p1763_p1), %s1482_s11, 256  }
 0x4ad   : > { %1879 = vsyncadd (%p1763_p1), %s1482_s11, 4294967040  ;;  %p14_p2 = scmp.ge.s32.totalorder %s1951_s21, 4   ;;  %s2258_s15 = smov %s1886_s16 }
 0x4ae   : > { %s2259_s16 = smov %s1890_s17  ;;  %s2260_s17 = smov %s1962_s24 }
 0x4af   : > { %s2261_s18 = smov %s1951_s21  ;;  %16 = sbr.rel (!%p14_p2) target bundleno = 3 (0x3), region = 71 }
 0x4b4   :  { %1487 = vsyncpa [#allocation3], 1 }
 0x4b5   :  { %1489 = vsyncpa [#allocation3 + $0x1], 1 }

// kernel: tpu_custom_call.1
= control target key start
LH: loop header
LB: loop body
LE: loop exit
PB: predicated region body
PF: predicated region fallthrough
CT: control target
= control target key end

     0   :  { %9 = vsyncpa [#allocation3], 0  ;;  %s2251_s0 = inlined_call_operand.vmem [shape: f32[2,16,8], index: 0, kind: input, shape index: {}]   ;;  %s2252_s1 = inlined_call_operand.vmem [shape: bf16[12,8,4], index: 1, kind: input, shape index: {}]   ;;  %s2253_s2 = inlined_call_operand.vmem [shape: bf16[4,4,16], index: 2, kind: input, shape index: {}]   ;;  %s2254_s3 = inlined_call_operand.vmem [shape: f32[1,16], index: 3, kind: input, shape index: {}]   ;;  %s2255_s4 = inlined_call_operand.hbm [shape: f32[2,16,16], index: 4, kind: output, shape index: {}]  }
   0x1   :  { %11 = vsyncpa [#allocation3 + $0x1], 0  ;;  %s1926_s15 = smov 0   ;;  %s1928_s16 = smov 0  }
   0x2   :  { %s1930_s17 = smov 0   ;;  %s1932_s18 = smov 0  }
   0x3 LB: > { %s1947_s19 = sadd.s32 4294967295, %s1894_s18   ;;  %s1528_s20 = sadd.s32 4294967294, %s1894_s18   ;;  %s1894_s18 = sphi %s1932_s18, %s2261_s18   ;;  %s1890_s17 = sphi %s1930_s17, %s2260_s17   ;;  %s1886_s16 = sphi %s1928_s16, %s2259_s16   ;;  %s1882_s15 = sphi %s1926_s15, %s2258_s15  }
   0x4   : > { %s1951_s21 = sadd.s32 1, %s1894_s18   ;;  %s113_s22 = sadd.s32 1, %s1890_s17 }
   0x5   : > { %s110_s23 = ssub.s32 %s1894_s18, %s1951_s21  ;;  %p123_p0 = scmp.ne.s32.totalorder %s1890_s17, %s1886_s16 }
   0x6   : > { %p111_p1 = scmp.eq.s32.totalorder %s110_s23, 0  ;;  %p124_p2 = scmp.eq.s32.totalorder %s1947_s19, 1 }
   0x7   : > { %p129_p3 = scmp.ne.s32.totalorder %s1886_s16, %s1882_s15  ;;  %p130_p4 = scmp.eq.s32.totalorder %s1528_s20, 1 }
   0x8   : > { %s1962_s24 = scalar_select %p111_p1, %s1890_s17, %s113_s22  }
   0x9   : > { %p1964_p5 = por %p124_p2, %p123_p0  ;;  %p1968_p6 = por %p130_p4, %p129_p3 }
   0xa   : > { %p1531_p7 = scmp.ge.s32.totalorder %s1894_s18, 1  ;;  %p165_p8 = scmp.lt.s32.totalorder %s1894_s18, 3 }
   0xc   : > { %p166_p9 = pnand %p1531_p7, %p165_p8 }
   0xd   : > { %p191_p10 = scmp.lt.s32.totalorder (!%p166_p9), %s1947_s19, 1  ;;  %s188_s30 = sand.u32 (!%p166_p9), 1, %s1886_s16  }
   0xe   : > { %169 = sbr.rel (%p166_p9) target bundleno = 1190 (0x4a6), region = 36  ;;  %s1566_s8 = sshll.u32 (!%p166_p9), %s1947_s19, 8 }
   0xf   : > { %s1898_s20 = smov (!%p166_p9), [#allocation2]  }
  0x10   : > { %s1838_s22 = sshll.u32 (!%p166_p9), %s1898_s20, 4  ;;  %s1839_s22 = int_to_ptr.vmem [resolvable:$false] %s1838_s22 }
  0x11   : > { %s1840_s23 = scalar_lea.vmem (!%p166_p9), %s1839_s22, 512 }
  0x13   : > { %v200_v0 = vld [vmem:[%s2252_s1] sm:$0xf]  ;;  %vm216_vm0 = vcmask 1043456   ;;  %v201_v1 = vld [vmem:[%s2252_s1 + $0x4] sm:$0xf]  ;;  %v1896_v2 = vmov 0.0  }
  0x14   : > { %1615 = vmatprep.subr.bf16.mxu0 %v1896_v2  ;;  %1621 = vmatprep.subr.bf16.mxu1 %v1896_v2  ;;  %v218_v3 = vsel %vm216_vm0, %v200_v0, 0  ;;  %v262_v4 = vsel %vm216_vm0, %v201_v1, 0  ;;  %vm1897_vm1 = vmmov 0   ;;  %s192_s5 = scalar_select %p191_p10, %s1947_s19, 1  ;;  %v202_v5 = vld [vmem:[%s2252_s1 + $0x8] sm:$0xf] }
  0x15   : > { %1616 = vmatpush3.bf16.msra.mxu0 %v218_v3  ;;  %1622 = vmatpush3.bf16.msra.mxu1 %v262_v4  ;;  %v203_v6 = vld [vmem:[%s2252_s1 + $0xc] sm:$0xf]  ;;  %vm212_vm2 = vcmask 64512   ;;  %v306_v10 = vsel %vm216_vm0, %v202_v5, 0  ;;  %v204_v12 = vld [vmem:[%s2252_s1 + $0x10] sm:$0xf] }
  0x16   : > { %1617 = vmatprep.mubr.msk.bf16.mxu0 %vm1897_vm1, %v1896_v2  ;;  %1623 = vmatprep.mubr.msk.bf16.mxu1 %vm1897_vm1, %v1896_v2  ;;  %s1565_s6 = sshll.u32 %s192_s5, 4  ;;  %v350_v11 = vsel %vm216_vm0, %v203_v6, 0  ;;  %v205_v13 = vld [vmem:[%s2252_s1 + $0x14] sm:$0xf]  ;;  %v394_v14 = vsel %vm216_vm0, %v204_v12, 0  ;;  %vm757_vm3 = vcmask 31744  }
  0x17   : > { %1627 = vmatprep.subr.bf16.mxu0 %v1896_v2  ;;  %1633 = vmatprep.subr.bf16.mxu1 %v1896_v2  ;;  %s195_s13 = scalar_lea.vmem %s2251_s0, %s1565_s6  ;;  %v438_v15 = vsel %vm216_vm0, %v205_v13, 0  ;;  %v206_v16 = vld [vmem:[%s2252_s1 + $0x18] sm:$0xf]  ;;  %v207_v17 = vld [vmem:[%s2252_s1 + $0x1c] sm:$0xf]  ;;  %vm961_vm5 = vcmask 130048  }
  0x18   : > { %v197_v7 = vld [vmem:[%s195_s13] sm:$0xff]  ;;  %v198_v8 = vld [vmem:[%s195_s13 + $0x8] sm:$0xff]  ;;  %v482_v18 = vsel %vm216_vm0, %v206_v16, 0  ;;  %v526_v19 = vsel %vm216_vm0, %v207_v17, 0  ;;  %vm1241_vm7 = vcmask 1041408   ;;  %s1532_s5 = sshll.u32 %s188_s30, 4  ;;  %s2204_s13 = scalar_lea.hbm %s2255_s4, %s1566_s8 }
  0x19   : > { %v199_v9 = vpack.c.bf16 %v198_v8, %v197_v7  ;;  %v208_v20 = vld [vmem:[%s2252_s1 + $0x20] sm:$0xf]  ;;  %v209_v22 = vld [vmem:[%s2252_s1 + $0x24] sm:$0xf]  ;;  %v210_v24 = vld [vmem:[%s2252_s1 + $0x28] sm:$0xf] }
  0x1a   : > { %v570_v21 = vsel %vm216_vm0, %v208_v20, 0  ;;  %v614_v23 = vsel %vm216_vm0, %v209_v22, 0  ;;  %v658_v25 = vsel %vm216_vm0, %v210_v24, 0  ;;  %v211_v26 = vld [vmem:[%s2252_s1 + $0x2c] sm:$0xf]  ;;  %s190_s9 = scalar_lea.vmem [#allocation2], %s1532_s5 }
  0x1b   : > { %1618 = vmatmul.mubr.msk.bf16.vlgmr.msra.gmra.mxu0 %vm212_vm2, %v199_v9  ;;  %1624 = vmatmul.mubr.msk.bf16.vlgmr.msra.gmra.mxu1 %vm212_vm2, %v199_v9  ;;  %v702_v27 = vsel %vm216_vm0, %v211_v26, 0  ;;  %s1466_s10 = sshll.u32 %s190_s9, 4  ;;  %s2211_s19 = scalar_lea.sflag [#allocation3], %s188_s30  ;;  %s2206_s10 = int_to_ptr.vmem [resolvable:$true] %s1466_s10 }
  0x1c   : > { %1628 = vmatpush3.bf16.msra.mxu0 %v306_v10  ;;  %1634 = vmatpush3.bf16.msra.mxu1 %v350_v11  ;;  %s1834_s14 = scalar_lea.vmem %s2206_s10, 256  ;;  %p1841_p0 = scmp.lt.s32.totalorder %s2206_s10, %s1839_s22 }
  0x1d   : > { %1629 = vmatprep.mubr.msk.bf16.mxu0 %vm1897_vm1, %v1896_v2  ;;  %1635 = vmatprep.mubr.msk.bf16.mxu1 %vm1897_vm1, %v1896_v2  ;;  %p1835_p11 = scmp.ne.s32.totalorder %s2206_s10, %s1834_s14  ;;  %p1842_p1 = scmp.lt.s32.totalorder %s1840_s23, %s1834_s14 }
  0x1e   : > { %1639 = vmatprep.subr.bf16.mxu0 %v1896_v2  ;;  %1645 = vmatprep.subr.bf16.mxu1 %v1896_v2 }
  0x1f   : > { %p1836_p12 = pnand %p1835_p11, %p1964_p5  ;;  %p1843_p2 = por %p1842_p1, %p1841_p0 }
  0x21   : > { %p1837_p13 = pneg %p1836_p12 }
  0x23   : > { %1630 = vmatmul.mubr.msk.bf16.vlgmr.msra.gmra.mxu0 %vm212_vm2, %v199_v9  ;;  %1636 = vmatmul.mubr.msk.bf16.vlgmr.msra.gmra.mxu1 %vm212_vm2, %v199_v9  ;;  %p1844_p3 = pnand %p1843_p2, %p1837_p13 }
  0x24   : > { %1640 = vmatpush3.bf16.msra.mxu0 %v394_v14  ;;  %1646 = vmatpush3.bf16.msra.mxu1 %v438_v15 }
  0x25   : > { %1641 = vmatprep.mubr.msk.bf16.mxu0 %vm1897_vm1, %v1896_v2  ;;  %1647 = vmatprep.mubr.msk.bf16.mxu1 %vm1897_vm1, %v1896_v2 }
  0x26   : > { %1651 = vmatprep.subr.bf16.mxu0 %v1896_v2  ;;  %1657 = vmatprep.subr.bf16.mxu1 %v1896_v2 }
  0x2b   : > { %1642 = vmatmul.mubr.msk.bf16.vlgmr.msra.gmra.mxu0 %vm212_vm2, %v199_v9  ;;  %1648 = vmatmul.mubr.msk.bf16.vlgmr.msra.gmra.mxu1 %vm212_vm2, %v199_v9 }
  0x2c   : > { %1652 = vmatpush3.bf16.msra.mxu0 %v482_v18  ;;  %1658 = vmatpush3.bf16.msra.mxu1 %v526_v19 }
  0x2d   : > { %1653 = vmatprep.mubr.msk.bf16.mxu0 %vm1897_vm1, %v1896_v2  ;;  %1659 = vmatprep.mubr.msk.bf16.mxu1 %vm1897_vm1, %v1896_v2 }
  0x2e   : > { %1663 = vmatprep.subr.bf16.mxu0 %v1896_v2  ;;  %1669 = vmatprep.subr.bf16.mxu1 %v1896_v2 }
  0x33   : > { %1654 = vmatmul.mubr.msk.bf16.vlgmr.msra.gmra.mxu0 %vm212_vm2, %v199_v9  ;;  %1660 = vmatmul.mubr.msk.bf16.vlgmr.msra.gmra.mxu1 %vm212_vm2, %v199_v9 }
  0x34   : > { %1665 = vmatprep.mubr.msk.bf16.mxu0 %vm1897_vm1, %v1896_v2  ;;  %1671 = vmatprep.mubr.msk.bf16.mxu1 %vm1897_vm1, %v1896_v2 }
  0x35   : > { %1664 = vmatpush3.bf16.msra.mxu0 %v570_v21  ;;  %1670 = vmatpush3.bf16.msra.mxu1 %v614_v23 }
  0x36   : > { %1675 = vmatprep.subr.bf16.mxu0 %v1896_v2  ;;  %1681 = vmatprep.subr.bf16.mxu1 %v1896_v2 }
  0x3b   : > { %1666 = vmatmul.mubr.msk.bf16.vlgmr.msra.gmra.mxu0 %vm212_vm2, %v199_v9  ;;  %1672 = vmatmul.mubr.msk.bf16.vlgmr.msra.gmra.mxu1 %vm212_vm2, %v199_v9 }
  0x3c   : > { %1677 = vmatprep.mubr.msk.bf16.mxu0 %vm1897_vm1, %v1896_v2  ;;  %1676 = vmatpush3.bf16.msra.mxu0 %v658_v25 }
  0x3d   : > { %1683 = vmatprep.mubr.msk.bf16.mxu1 %vm1897_vm1, %v1896_v2  ;;  %1687 = vmatprep.subr.bf16.mxu0 %v1896_v2 }
  0x3e   : > { %1682 = vmatpush3.bf16.msra.mxu1 %v702_v27 }
  0x3f   : > { %1693 = vmatprep.subr.bf16.mxu1 %v1896_v2 }
  0x43   : > { %1678 = vmatmul.mubr.msk.bf16.vlgmr.msra.gmra.mxu0 %vm212_vm2, %v199_v9  ;;  %1684 = vmatmul.mubr.msk.bf16.vlgmr.msra.gmra.mxu1 %vm212_vm2, %v199_v9 }
  0x44   : > { %1689 = vmatprep.mubr.msk.bf16.mxu0 %vm1897_vm1, %v1896_v2  ;;  %1695 = vmatprep.mubr.msk.bf16.mxu1 %vm1897_vm1, %v1896_v2 }
  0xdb   : > { %v254_v28 = vpop.f32.mrf.mxu0  ;;  %v298_v29 = vpop.f32.mrf.mxu1 }
  0xdd   : > { %v1619_v30 = vpop.f32.mrf.mxu0  ;;  %v1625_v31 = vpop.f32.mrf.mxu1 }
  0xdf   : > { %v257_v32 = vpop.f32.mrf.mxu0  ;;  %v301_v33 = vpop.f32.mrf.mxu1 }
  0xe0   : > { %v745_v62 = vpack.c.bf16 %v257_v32, %v254_v28  ;;  %v746_v63 = vpack.c.bf16 %v301_v33, %v298_v29  ;;  %v946_v29 = vlaneseq }
  0xe1   : > { %v1620_v34 = vpop.f32.mrf.mxu0  ;;  %v1626_v35 = vpop.f32.mrf.mxu1 }
  0xe2   : > { %v947_v30 = vshrl.u32 %v946_v29, 7  ;;  %v950_v31 = vand.u32 127, %v946_v29 }
  0xe3   : > { %v342_v36 = vpop.f32.mrf.mxu0  ;;  %v386_v37 = vpop.f32.mrf.mxu1 }
  0xe4   : > { %vm951_vm4 = vcmp.gt.s32.totalorder %v950_v31, %v947_v30  ;;  %v948_v32 = vadd.s32 8, %v947_v30 }
  0xe5   : > { %v1631_v38 = vpop.f32.mrf.mxu0  ;;  %v1637_v39 = vpop.f32.mrf.mxu1 }
  0xe6   : > { %vm952_vm6 = vcmp.gt.s32.totalorder %v950_v31, %v948_v32 }
  0xe7   : > { %v345_v40 = vpop.f32.mrf.mxu0  ;;  %v389_v41 = vpop.f32.mrf.mxu1 }
  0xe8   : > { %v747_v7 = vpack.c.bf16 %v345_v40, %v342_v36  ;;  %v748_v8 = vpack.c.bf16 %v389_v41, %v386_v37 }
  0xe9   : > { %v1632_v42 = vpop.f32.mrf.mxu0  ;;  %v1638_v43 = vpop.f32.mrf.mxu1 }
  0xeb   : > { %v430_v44 = vpop.f32.mrf.mxu0  ;;  %v474_v45 = vpop.f32.mrf.mxu1 }
  0xed   : > { %v1643_v46 = vpop.f32.mrf.mxu0  ;;  %v1649_v47 = vpop.f32.mrf.mxu1 }
  0xef   : > { %v433_v48 = vpop.f32.mrf.mxu0  ;;  %v477_v49 = vpop.f32.mrf.mxu1 }
  0xf0   : > { %v749_v50 = vpack.c.bf16 %v433_v48, %v430_v44  ;;  %v750_v51 = vpack.c.bf16 %v477_v49, %v474_v45 }
  0xf1   : > { %v1644_v52 = vpop.f32.mrf.mxu0  ;;  %v1650_v53 = vpop.f32.mrf.mxu1 }
  0xf2   : > { %v762_v54 = vsel %vm757_vm3, %v749_v50, 0  ;;  %v809_v55 = vsel %vm757_vm3, %v750_v51, 0 }
  0xf3   : > { %v518_v56 = vpop.f32.mrf.mxu0  ;;  %v562_v57 = vpop.f32.mrf.mxu1  ;;  %1688 = vmatpush3.bf16.xpose.msra.mxu0 %v762_v54  ;;  %1694 = vmatpush3.bf16.xpose.msra.mxu1 %v809_v55 }
  0xf4   : > { %1699 = vmatprep.subr.bf16.mxu0 %v1896_v2  ;;  %1705 = vmatprep.subr.bf16.mxu1 %v1896_v2 }
  0xf5   : > { %v1655_v58 = vpop.f32.mrf.mxu0  ;;  %v1661_v59 = vpop.f32.mrf.mxu1 }
  0xf7   : > { %v521_v60 = vpop.f32.mrf.mxu0  ;;  %v565_v61 = vpop.f32.mrf.mxu1 }
  0xf8   : > { %v751_v0 = vpack.c.bf16 %v521_v60, %v518_v56  ;;  %v752_v1 = vpack.c.bf16 %v565_v61, %v562_v57 }
  0xf9   : > { %v1656_v3 = vpop.f32.mrf.mxu0  ;;  %v1662_v4 = vpop.f32.mrf.mxu1 }
  0xfa   : > { %v856_v5 = vsel %vm757_vm3, %v751_v0, 0  ;;  %v903_v6 = vsel %vm757_vm3, %v752_v1, 0  ;;  %1690 = vmatmul.mubr.msk.bf16.vlgmr.msra.gmra.mxu0 %vm757_vm3, %v745_v62  ;;  %1696 = vmatmul.mubr.msk.bf16.vlgmr.msra.gmra.mxu1 %vm757_vm3, %v746_v63 }
  0xfb   : > { %1700 = vmatpush3.bf16.xpose.msra.mxu0 %v856_v5  ;;  %1706 = vmatpush3.bf16.xpose.msra.mxu1 %v903_v6  ;;  %v606_v9 = vpop.f32.mrf.mxu0  ;;  %v650_v12 = vpop.f32.mrf.mxu1 }
  0xfc   : > { %1701 = vmatprep.mubr.msk.bf16.mxu0 %vm1897_vm1, %v1896_v2  ;;  %1707 = vmatprep.mubr.msk.bf16.mxu1 %vm1897_vm1, %v1896_v2 }
  0xfd   : > { %1711 = vmatprep.subr.bf16.mxu0 %v1896_v2  ;;  %1717 = vmatprep.subr.bf16.mxu1 %v1896_v2  ;;  %v1667_v10 = vpop.f32.mrf.mxu0  ;;  %v1673_v15 = vpop.f32.mrf.mxu1 }
  0xff   : > { %v609_v11 = vpop.f32.mrf.mxu0  ;;  %v653_v16 = vpop.f32.mrf.mxu1 }
 0x100   : > { %v753_v13 = vpack.c.bf16 %v609_v11, %v606_v9  ;;  %v754_v18 = vpack.c.bf16 %v653_v16, %v650_v12 }
 0x101   : > { %v1668_v14 = vpop.f32.mrf.mxu0  ;;  %v1674_v19 = vpop.f32.mrf.mxu1 }
 0x102   : > { %1702 = vmatmul.mubr.msk.bf16.vlgmr.msra.gmra.mxu0 %vm757_vm3, %v747_v7  ;;  %1708 = vmatmul.mubr.msk.bf16.vlgmr.msra.gmra.mxu1 %vm757_vm3, %v748_v8 }
 0x103   : > { %1713 = vmatprep.mubr.msk.bf16.mxu0 %vm1897_vm1, %v1896_v2  ;;  %1719 = vmatprep.mubr.msk.bf16.mxu1 %vm1897_vm1, %v1896_v2  ;;  %v2101_v17 = vpop.f32.mrf.mxu0  ;;  %v2106_v22 = vpop.f32.mrf.mxu1 }
 0x104   : > { %1712 = vmatpush3.bf16.msra.mxu0 %v753_v13  ;;  %1718 = vmatpush3.bf16.msra.mxu1 %v754_v18 }
 0x105   : > { %1723 = vmatprep.subr.bf16.mxu0 %v1896_v2  ;;  %v1679_v20 = vpop.f32.mrf.mxu0  ;;  %1729 = vmatprep.subr.bf16.mxu1 %v1896_v2  ;;  %v1685_v25 = vpop.f32.mrf.mxu1 }
 0x107   : > { %v2104_v21 = vpop.f32.mrf.mxu0  ;;  %v2111_v26 = vpop.f32.mrf.mxu1 }
 0x108   : > { %v755_v23 = vpack.c.bf16 %v2104_v21, %v2101_v17  ;;  %v756_v27 = vpack.c.bf16 %v2111_v26, %v2106_v22  ;;  %v1234_v22 = vld [vmem:[%s2253_s2] sm:$0x3] }
 0x109   : > { %v1680_v24 = vpop.f32.mrf.mxu0  ;;  %v1686_v28 = vpop.f32.mrf.mxu1  ;;  %v1243_v26 = vsel %vm1241_vm7, %v1234_v22, 0 }
 0x1ba   : > { %v798_v33 = vpop.f32.mrf.mxu0  ;;  %v845_v34 = vpop.f32.mrf.mxu1 }
 0x1bb   : > { %v953_v35 = vsel %vm951_vm4, -1e+30, %v798_v33  ;;  %v955_v36 = vsel %vm951_vm4, -1e+30, %v845_v34 }
 0x1bc   : > { %v1691_v37 = vpop.f32.mrf.mxu0  ;;  %v1697_v38 = vpop.f32.mrf.mxu1  ;;  %v968_v39 = vsel %vm961_vm5, %v955_v36, -inf  ;;  %v962_v40 = vsel %vm961_vm5, %v953_v35, -inf }
 0x1bd   : > { %969 = vmax.xlane.f32.xlu1 %v968_v39  ;;  %963 = vmax.xlane.f32.xlu0 %v962_v40 }
 0x1be   : > { %v801_v41 = vpop.f32.mrf.mxu0  ;;  %v848_v42 = vpop.f32.mrf.mxu1 }
 0x1bf   : > { %v954_v43 = vsel %vm952_vm6, -1e+30, %v801_v41  ;;  %v956_v44 = vsel %vm952_vm6, -1e+30, %v848_v42 }
 0x1c0   : > { %v1692_v45 = vpop.f32.mrf.mxu0  ;;  %v1698_v46 = vpop.f32.mrf.mxu1  ;;  %v971_v47 = vsel %vm961_vm5, %v956_v44, -inf  ;;  %v965_v48 = vsel %vm961_vm5, %v954_v43, -inf }
 0x1c1   : > { %972 = vmax.xlane.f32.xlu1 %v971_v47  ;;  %966 = vmax.xlane.f32.xlu0 %v965_v48 }
 0x1c2   : > { %v892_v49 = vpop.f32.mrf.mxu0  ;;  %v939_v50 = vpop.f32.mrf.mxu1 }
 0x1c3   : > { %v957_v51 = vsel %vm951_vm4, -1e+30, %v892_v49  ;;  %v959_v55 = vsel %vm951_vm4, -1e+30, %v939_v50 }
 0x1c4   : > { %v1703_v52 = vpop.f32.mrf.mxu0  ;;  %v1709_v53 = vpop.f32.mrf.mxu1  ;;  %v974_v54 = vsel %vm961_vm5, %v957_v51, -inf  ;;  %v980_v61 = vsel %vm961_vm5, %v959_v55, -inf }
 0x1c5   : > { %975 = vmax.xlane.f32.xlu0 %v974_v54 }
 0x1c6   : > { %v895_v56 = vpop.f32.mrf.mxu0  ;;  %v942_v57 = vpop.f32.mrf.mxu1 }
 0x1c7   : > { %v958_v58 = vsel %vm952_vm6, -1e+30, %v895_v56  ;;  %v960_v63 = vsel %vm952_vm6, -1e+30, %v942_v57 }
 0x1c8   : > { %v1704_v59 = vpop.f32.mrf.mxu0  ;;  %v1710_v60 = vpop.f32.mrf.mxu1  ;;  %v977_v62 = vsel %vm961_vm5, %v958_v58, -inf  ;;  %v983_v0 = vsel %vm961_vm5, %v960_v63, -inf }
 0x1c9   : > { %981 = vmax.xlane.f32.xlu0 %v980_v61  ;;  %978 = vmax.xlane.f32.xlu1 %v977_v62 }
 0x1cd   : > { %984 = vmax.xlane.f32.xlu1 %v983_v0 }
 0x246   : > { %v970_v1 = vpop.xlane.xlu1 %969  ;;  %v964_v3 = vpop.xlane.xlu0 %963 }
 0x247   : > { %v988_v4 = vsub.f32 %v955_v36, %v970_v1  ;;  %v986_v5 = vsub.f32 %v953_v35, %v964_v3 }
 0x249   : > { %v994_v6 = vmul.f32 1.442695, %v986_v5  ;;  %v998_v7 = vmul.f32 1.442695, %v988_v4 }
 0x24a   : > { %v973_v8 = vpop.xlane.xlu1 %972  ;;  %v967_v9 = vpop.xlane.xlu0 %966 }
 0x24b   : > { %v989_v10 = vsub.f32 %v956_v44, %v973_v8  ;;  %v987_v11 = vsub.f32 %v954_v43, %v967_v9  ;;  %1802 = vpow2.f32 %v994_v6 }
 0x24c   : > { %1804 = vpow2.f32 %v998_v7 }
 0x24d   : > { %v996_v12 = vmul.f32 1.442695, %v987_v11  ;;  %v1000_v13 = vmul.f32 1.442695, %v989_v10 }
 0x24e   : > { %v976_v14 = vpop.xlane.xlu0 %975 }
 0x24f   : > { %v990_v15 = vsub.f32 %v957_v51, %v976_v14  ;;  %1806 = vpow2.f32 %v996_v12 }
 0x250   : > { %1808 = vpow2.f32 %v1000_v13  ;;  %v1236_v13 = vld [vmem:[%s2253_s2 + $0x4] sm:$0x3] }
 0x251   : > { %v1002_v16 = vmul.f32 1.442695, %v990_v15 }
 0x252   : > { %v982_v18 = vpop.xlane.xlu0 %981  ;;  %v979_v19 = vpop.xlane.xlu1 %978 }
 0x253   : > { %1810 = vpow2.f32 %v1002_v16  ;;  %v992_v20 = vsub.f32 %v959_v55, %v982_v18  ;;  %v991_v24 = vsub.f32 %v958_v58, %v979_v19  ;;  %v1337_v18 = vsel %vm1241_vm7, %v1236_v13, 0 }
 0x255   : > { %v1006_v25 = vmul.f32 1.442695, %v992_v20  ;;  %v1004_v28 = vmul.f32 1.442695, %v991_v24  ;;  %v1237_v24 = vld [vmem:[%s2253_s2 + $0x6] sm:$0x3] }
 0x256   : > { %v985_v29 = vpop.xlane.xlu1 %984 }
 0x257   : > { %1812 = vpow2.f32 %v1006_v25  ;;  %v993_v30 = vsub.f32 %v960_v63, %v985_v29 }
 0x258   : > { %1814 = vpow2.f32 %v1004_v28  ;;  %v1803_v31 = vpop.eup %1802 }
 0x259   : > { %v1008_v32 = vmul.f32 1.442695, %v993_v30  ;;  %v1010_v33 = vsel %vm961_vm5, %v1803_v31, 0.0  ;;  %v1805_v34 = vpop.eup %1804  ;;  %v1384_v30 = vsel %vm1241_vm7, %v1237_v24, 0 }
 0x25a   : > { %1011 = vadd.xlane.f32.xlu0 %v1010_v33  ;;  %v1016_v36 = vsel %vm961_vm5, %v1805_v34, 0.0 }
 0x25b   : > { %1816 = vpow2.f32 %v1008_v32 }
 0x25c   : > { %v1807_v35 = vpop.eup %1806 }
 0x25d   : > { %v1013_v37 = vsel %vm961_vm5, %v1807_v35, 0.0  ;;  %v1809_v38 = vpop.eup %1808 }
 0x25e   : > { %1017 = vadd.xlane.f32.xlu0 %v1016_v36  ;;  %1014 = vadd.xlane.f32.xlu1 %v1013_v37  ;;  %v1019_v41 = vsel %vm961_vm5, %v1809_v38, 0.0 }
 0x260   : > { %v1811_v39 = vpop.eup %1810 }
 0x261   : > { %v1022_v40 = vsel %vm961_vm5, %v1811_v39, 0.0 }
 0x262   : > { %1023 = vadd.xlane.f32.xlu0 %v1022_v40  ;;  %1020 = vadd.xlane.f32.xlu1 %v1019_v41 }
 0x264   : > { %v1813_v42 = vpop.eup %1812 }
 0x265   : > { %v1815_v43 = vpop.eup %1814  ;;  %v1028_v44 = vsel %vm961_vm5, %v1813_v42, 0.0 }
 0x266   : > { %v1025_v45 = vsel %vm961_vm5, %v1815_v43, 0.0  ;;  %1029 = vadd.xlane.f32.xlu0 %v1028_v44 }
 0x267   : > { %1026 = vadd.xlane.f32.xlu1 %v1025_v45 }
 0x268   : > { %v1817_v46 = vpop.eup %1816 }
 0x269   : > { %v1031_v47 = vsel %vm961_vm5, %v1817_v46, 0.0 }
 0x26b   : > { %1032 = vadd.xlane.f32.xlu1 %v1031_v47 }
 0x2e3   : > { %v1012_v48 = vpop.xlane.xlu0 %1011 }
 0x2e4   : > { %1818 = vrcp.f32 %v1012_v48 }
 0x2e7   : > { %v1018_v49 = vpop.xlane.xlu0 %1017  ;;  %v1015_v50 = vpop.xlane.xlu1 %1014 }
 0x2e8   : > { %1820 = vrcp.f32 %v1015_v50 }
 0x2e9   : > { %1822 = vrcp.f32 %v1018_v49 }
 0x2eb   : > { %v1024_v51 = vpop.xlane.xlu0 %1023  ;;  %v1021_v52 = vpop.xlane.xlu1 %1020 }
 0x2ec   : > { %1824 = vrcp.f32 %v1021_v52 }
 0x2ed   : > { %1826 = vrcp.f32 %v1024_v51 }
 0x2ef   : > { %v1030_v53 = vpop.xlane.xlu0 %1029 }
 0x2f0   : > { %v1027_v54 = vpop.xlane.xlu1 %1026 }
 0x2f1   : > { %1828 = vrcp.f32 %v1027_v54  ;;  %v1819_v56 = vpop.eup %1818 }
 0x2f2   : > { %1830 = vrcp.f32 %v1030_v53  ;;  %v1042_v58 = vmul.f32 %v1819_v56, %v1803_v31 }
 0x2f4   : > { %v1033_v55 = vpop.xlane.xlu1 %1032 }
 0x2f5   : > { %1832 = vrcp.f32 %v1033_v55  ;;  %v1821_v57 = vpop.eup %1820 }
 0x2f6   : > { %v1043_v59 = vmul.f32 %v1821_v57, %v1807_v35  ;;  %v1823_v60 = vpop.eup %1822 }
 0x2f7   : > { %v1044_v63 = vmul.f32 %v1823_v60, %v1805_v34 }
 0x2f8   : > { %v1050_v61 = vpack.c.bf16 %v1043_v59, %v1042_v58 }
 0x2f9   : > { %v1825_v62 = vpop.eup %1824 }
 0x2fa   : > { %1714 = vmatmul.mubr.msk.bf16.vlgmr.msra.gmra.mxu0 %vm961_vm5, %v1050_v61  ;;  %v1045_v0 = vmul.f32 %v1825_v62, %v1809_v38  ;;  %v1827_v1 = vpop.eup %1826  ;;  %v1559_v61 = vld [vmem:[%s2254_s3] ss:$0 sm:$0xff] }
 0x2fb   : > { %1724 = vmatpush3.bf16.msra.mxu0 %v755_v23  ;;  %1725 = vmatprep.mubr.msk.bf16.mxu0 %vm1897_vm1, %v1896_v2  ;;  %v1046_v6 = vmul.f32 %v1827_v1, %v1811_v39 }
 0x2fc   : > { %v1051_v3 = vpack.c.bf16 %v1045_v0, %v1044_v63  ;;  %1735 = vmatprep.subr.bf16.mxu0 %v1896_v2 }
 0x2fe   : > { %v1829_v4 = vpop.eup %1828  ;;  %1720 = vmatmul.mubr.msk.bf16.vlgmr.msra.gmra.mxu1 %vm961_vm5, %v1051_v3 }
 0x2ff   : > { %v1831_v5 = vpop.eup %1830  ;;  %v1047_v7 = vmul.f32 %v1829_v4, %v1815_v43  ;;  %1730 = vmatpush3.bf16.msra.mxu1 %v756_v27  ;;  %1731 = vmatprep.mubr.msk.bf16.mxu1 %vm1897_vm1, %v1896_v2  ;;  %v1235_v27 = vld [vmem:[%s2253_s2 + $0x2] sm:$0x3] }
 0x300   : > { %1741 = vmatprep.subr.bf16.mxu1 %v1896_v2  ;;  %v1048_v23 = vmul.f32 %v1831_v5, %v1813_v42  ;;  %v1290_v10 = vsel %vm1241_vm7, %v1235_v27, 0 }
 0x301   : > { %v1052_v21 = vpack.c.bf16 %v1047_v7, %v1046_v6 }
 0x302   : > { %v1833_v17 = vpop.eup %1832 }
 0x303   : > { %v1049_v8 = vmul.f32 %v1833_v17, %v1817_v46  ;;  %1726 = vmatmul.mubr.msk.bf16.vlgmr.msra.gmra.mxu0 %vm961_vm5, %v1052_v21 }
 0x304   : > { %1737 = vmatprep.mubr.msk.bf16.mxu0 %vm1897_vm1, %v1896_v2  ;;  %1736 = vmatpush3.bf16.msra.mxu0 %v1243_v26 }
 0x305   : > { %v1053_v9 = vpack.c.bf16 %v1049_v8, %v1048_v23  ;;  %1747 = vmatprep.subr.bf16.mxu0 %v1896_v2 }
 0x307   : > { %1732 = vmatmul.mubr.msk.bf16.vlgmr.msra.gmra.mxu1 %vm961_vm5, %v1053_v9 }
 0x308   : > { %1743 = vmatprep.mubr.msk.bf16.mxu1 %vm1897_vm1, %v1896_v2  ;;  %1742 = vmatpush3.bf16.msra.mxu1 %v1290_v10 }
 0x309   : > { %1753 = vmatprep.subr.bf16.mxu1 %v1896_v2 }
 0x3ba   : > { %v1091_v11 = vpop.f32.mrf.mxu0 }
 0x3bc   : > { %v1715_v12 = vpop.f32.mrf.mxu0 }
 0x3be   : > { %v1094_v14 = vpop.f32.mrf.mxu0  ;;  %v1135_v15 = vpop.f32.mrf.mxu1 }
 0x3bf   : > { %v1230_v16 = vpack.c.bf16 %v1094_v14, %v1091_v11 }
 0x3c0   : > { %v1716_v19 = vpop.f32.mrf.mxu0  ;;  %v1721_v20 = vpop.f32.mrf.mxu1 }
 0x3c1   : > { %1738 = vmatmul.mubr.msk.bf16.vlgmr.msra.gmra.mxu0 %vm757_vm3, %v1230_v16 }
 0x3c2   : > { %v1138_v25 = vpop.f32.mrf.mxu1  ;;  %1748 = vmatpush3.bf16.msra.mxu0 %v1337_v18  ;;  %1749 = vmatprep.mubr.msk.bf16.mxu0 %vm1897_vm1, %v1896_v2 }
 0x3c3   : > { %v1179_v28 = vpop.f32.mrf.mxu0  ;;  %v1231_v29 = vpack.c.bf16 %v1138_v25, %v1135_v15 }
 0x3c4   : > { %v1722_v31 = vpop.f32.mrf.mxu1 }
 0x3c5   : > { %v1727_v32 = vpop.f32.mrf.mxu0  ;;  %1744 = vmatmul.mubr.msk.bf16.vlgmr.msra.gmra.mxu1 %vm757_vm3, %v1231_v29 }
 0x3c6   : > { %1754 = vmatpush3.bf16.msra.mxu1 %v1384_v30  ;;  %1755 = vmatprep.mubr.msk.bf16.mxu1 %vm1897_vm1, %v1896_v2 }
 0x3c7   : > { %v1182_v33 = vpop.f32.mrf.mxu0  ;;  %v1223_v34 = vpop.f32.mrf.mxu1 }
 0x3c8   : > { %v1232_v35 = vpack.c.bf16 %v1182_v33, %v1179_v28 }
 0x3c9   : > { %v1728_v36 = vpop.f32.mrf.mxu0  ;;  %v1733_v37 = vpop.f32.mrf.mxu1 }
 0x3ca   : > { %1750 = vmatmul.mubr.msk.bf16.vlgmr.msra.gmra.mxu0 %vm757_vm3, %v1232_v35 }
 0x3cb   : > { %v1226_v38 = vpop.f32.mrf.mxu1 }
 0x3cc   : > { %v1233_v39 = vpack.c.bf16 %v1226_v38, %v1223_v34 }
 0x3cd   : > { %v1734_v40 = vpop.f32.mrf.mxu1 }
 0x3ce   : > { %1756 = vmatmul.mubr.msk.bf16.vlgmr.msra.gmra.mxu1 %vm757_vm3, %v1233_v39 }
 0x481   : > { %v1279_v41 = vpop.f32.mrf.mxu0 }
 0x482   : > { %v1427_v49 = vsel %vm961_vm5, %v1279_v41, 0.0 }
 0x483   : > { %v1739_v42 = vpop.f32.mrf.mxu0 }
 0x485   : > { %v1282_v43 = vpop.f32.mrf.mxu0  ;;  %v1326_v44 = vpop.f32.mrf.mxu1 }
 0x486   : > { %v1428_v2 = vsel %vm961_vm5, %v1326_v44, 0.0  ;;  %v1434_v58 = vsel %vm961_vm5, %v1282_v43, 0.0 }
 0x487   : > { %v1740_v45 = vpop.f32.mrf.mxu0  ;;  %v1745_v46 = vpop.f32.mrf.mxu1  ;;  %v1429_v51 = vadd.f32 %v1428_v2, %v1427_v49 }
 0x489   : > { %v1329_v47 = vpop.f32.mrf.mxu1 }
 0x48a   : > { %v1373_v48 = vpop.f32.mrf.mxu0  ;;  %v1435_v54 = vsel %vm961_vm5, %v1329_v47, 0.0 }
 0x48b   : > { %v1430_v50 = vsel %vm961_vm5, %v1373_v48, 0.0  ;;  %v1746_v52 = vpop.f32.mrf.mxu1  ;;  %v1436_v62 = vadd.f32 %v1435_v54, %v1434_v58 }
 0x48c   : > { %v1751_v53 = vpop.f32.mrf.mxu0  ;;  %v1431_v55 = vadd.f32 %v1430_v50, %v1429_v51 }
 0x48e   : > { %v1376_v56 = vpop.f32.mrf.mxu0  ;;  %v1420_v57 = vpop.f32.mrf.mxu1 }
 0x48f   : > { %v1437_v59 = vsel %vm961_vm5, %v1376_v56, 0.0  ;;  %v1432_v60 = vsel %vm961_vm5, %v1420_v57, 0.0 }
 0x490   : > { %v1433_v63 = vadd.f32 %v1432_v60, %v1431_v55  ;;  %v1752_v0 = vpop.f32.mrf.mxu0  ;;  %v1757_v1 = vpop.f32.mrf.mxu1  ;;  %v1438_v3 = vadd.f32 %v1437_v59, %v1436_v62 }
 0x492   : > { %v1448_v4 = vadd.f32 %v1559_v61, %v1433_v63  ;;  %v1423_v5 = vpop.f32.mrf.mxu1 }
 0x493   : > { %v1439_v6 = vsel %vm961_vm5, %v1423_v5, 0.0 }
 0x494   : > { %1450 = vst.msk [vmem:[%s190_s9] sm:$0xff] %vm961_vm5, %v1448_v4  ;;  %v1440_v7 = vadd.f32 %v1439_v6, %v1438_v3  ;;  %v1758_v17 = vpop.f32.mrf.mxu1 }
 0x496   : > { %v1449_v21 = vadd.f32 %v1559_v61, %v1440_v7 }
 0x498   : > { %1451 = vst.msk [vmem:[%s190_s9 + $0x8] sm:$0xff] %vm961_vm5, %v1449_v21 }
 0x499   : > { %1847 = shalt.err (!%p1844_p3)
}
 0x49a   : > { %s1848_s27 = scalar_lea.hbm %s2204_s13, 256  ;;  %s1852_s30 = scalar_lea.hbm %s2255_s4, 512 }
 0x49b   : > { %p1849_p4 = scmp.ne.s32.totalorder %s2204_s13, %s1848_s27  ;;  %p1853_p9 = scmp.lt.s32.totalorder %s2204_s13, %s2255_s4 }
 0x49c   : > { %p1854_p10 = scmp.lt.s32.totalorder %s1852_s30, %s1848_s27 }
 0x49d   : > { %p1850_p7 = pnand %p1849_p4, %p1964_p5 }
 0x49e   : > { %p1855_p11 = por %p1854_p10, %p1853_p9 }
 0x49f   : > { %p1851_p8 = pneg %p1850_p7 }
 0x4a1   : > { %p1856_p12 = pnand %p1855_p11, %p1851_p8 }
 0x4a3   : > { %1859 = shalt.err (!%p1856_p12)
}
 0x4a4   : > { %s1899_s7 = smov 128   ;;  %s1900_s8 = smov 8  }
 0x4a5   : > { %1759 = dma.vmem_to_hbm [thread:$0]  (%p1964_p5), %s2206_s10, 256, %s2204_s13, %s2211_s19, %s1899_s7, %s1899_s7, %s1900_s8  }
 0x4a6 PF: > { %p1765_p13 = scmp.ge.s32.totalorder %s1894_s18, 2  ;;  %s1481_s9 = sand.u32 1, %s1882_s15  }
 0x4a7   : > { %s1482_s11 = scalar_lea.sflag [#allocation3], %s1481_s9 }
 0x4a8   : > { %p1762_p0 = pnand %p1765_p13, %p1968_p6 }
 0x4aa   : > { %p1763_p1 = pneg %p1762_p0 }
 0x4ac   : > { %1877 = dma.done.wait (%p1763_p1), %s1482_s11, 256  }
 0x4ad   : > { %1879 = vsyncadd (%p1763_p1), %s1482_s11, 4294967040  ;;  %p14_p2 = scmp.ge.s32.totalorder %s1951_s21, 4   ;;  %s2258_s15 = smov %s1886_s16 }
 0x4ae   : > { %s2259_s16 = smov %s1890_s17  ;;  %s2260_s17 = smov %s1962_s24 }
 0x4af   : > { %s2261_s18 = smov %s1951_s21  ;;  %16 = sbr.rel (!%p14_p2) target bundleno = 3 (0x3), region = 71 }
 0x4b4   :  { %1487 = vsyncpa [#allocation3], 1 }
 0x4b5   :  { %1489 = vsyncpa [#allocation3 + $0x1], 1 }

</bundles_post_ra>
